<compile_context>
chip_gen: v7x
topology: tpu7x:2x2x1
jax: 0.10.0
libtpu: 0.0.40
codegen_flags: <defaults>
</compile_context>

<pallas_src>
import math
import functools

import jax
import jax.numpy as jnp
from jax.experimental import pallas as pl
from jax.experimental.pallas import tpu as pltpu


_NEG_INF = -1e30  # finite "minus infinity" for masking / running-max init


def _layernorm(x, gamma, beta, eps=1e-5):
    mu = jnp.mean(x, axis=-1, keepdims=True)
    var = jnp.mean((x - mu) ** 2, axis=-1, keepdims=True)
    return (x - mu) * jax.lax.rsqrt(var + eps) * gamma + beta


def _erf(x):
    # Abramowitz & Stegun 7.1.26 polynomial (|err| < 1.5e-7).  Keeps PyTorch's
    # exact (erf-based) GELU semantics while using only exp/VALU ops.
    p = 0.3275911
    a1, a2, a3, a4, a5 = (0.254829592, -0.284496736, 1.421413741,
                          -1.453152027, 1.061405429)
    s = jnp.where(x >= 0.0, 1.0, -1.0)
    z = jnp.abs(x)
    t = 1.0 / (1.0 + p * z)
    poly = ((((a5 * t + a4) * t + a3) * t + a2) * t + a1) * t
    return s * (1.0 - poly * jnp.exp(-z * z))


def _gelu_exact(x):
    return 0.5 * x * (1.0 + _erf(x * (1.0 / math.sqrt(2.0))))


# --------------------------------------------------------------------------
# Pass 1: LN1 + fused QKV projection, head-major outputs (K pre-transposed).
# --------------------------------------------------------------------------
def qkv_kernel(x_ref, ln1_g_ref, ln1_b_ref, w_qkv_ref, b_qkv_ref,
               q_ref, kT_ref, v_ref, *, n_head):
    _, tt, C = x_ref.shape
    hd = C // n_head
    xf = x_ref[0].astype(jnp.float32)                                  # (tt, C)
    hf = _layernorm(xf, ln1_g_ref[...], ln1_b_ref[...])
    qkv = jnp.dot(hf.astype(jnp.bfloat16), w_qkv_ref[...],
                  preferred_element_type=jnp.float32) + b_qkv_ref[...]  # (tt, 3C)
    for h in range(n_head):
        q_ref[0, h] = qkv[:, h * hd:(h + 1) * hd].astype(jnp.bfloat16)
        kT_ref[0, h] = qkv[:, C + h * hd:C + (h + 1) * hd].T.astype(jnp.bfloat16)
        v_ref[0, h] = qkv[:, 2 * C + h * hd:2 * C + (h + 1) * hd].astype(
            jnp.bfloat16)


# --------------------------------------------------------------------------
# Pass 2: causal flash attention (k-tiled) + proj + residual + LN2 + MLP.
# --------------------------------------------------------------------------
def attn_mlp_kernel(x_ref, q_ref, kT_ref, v_ref,
                    w_projh_ref, b_proj_ref,
                    ln2_g_ref, ln2_b_ref,
                    w1_ref, b1_ref, w2_ref, b2_ref,
                    o_ref,
                    m_scr, l_scr, acc_scr,
                    *, tq, tk):
    qi = pl.program_id(1)
    ki = pl.program_id(2)

    @pl.when(ki == 0)
    def _():
        m_scr[...] = jnp.full_like(m_scr, _NEG_INF)
        l_scr[...] = jnp.zeros_like(l_scr)
        acc_scr[...] = jnp.zeros_like(acc_scr)

    def flash_update(apply_causal_mask):
        q = q_ref[0]              # (H, tq, hd) bf16; 1/sqrt(hd) folded into W_q
        k = kT_ref[0]             # (H, hd, tk) bf16 (pre-transposed in pass 1)
        v = v_ref[0]              # (H, tk, hd) bf16
        s = jnp.einsum('hqd,hdk->hqk', q, k,
                       preferred_element_type=jnp.float32)       # (H, tq, tk)
        if apply_causal_mask:     # only the diagonal k-tile needs masking
            row = qi * tq + jax.lax.broadcasted_iota(jnp.int32, (tq, tk), 0)
            col = ki * tk + jax.lax.broadcasted_iota(jnp.int32, (tq, tk), 1)
            s = jnp.where((row >= col)[None, :, :], s, _NEG_INF)
        m_prev = m_scr[...]
        m_new = jnp.maximum(m_prev, jnp.max(s, axis=-1, keepdims=True))
        alpha = jnp.exp(m_prev - m_new)
        p = jnp.exp(s - m_new)
        l_scr[...] = alpha * l_scr[...] + jnp.sum(p, axis=-1, keepdims=True)
        acc_scr[...] = alpha * acc_scr[...] + jnp.einsum(
            'hqk,hkd->hqd', p.astype(jnp.bfloat16), v,
            preferred_element_type=jnp.float32)
        m_scr[...] = m_new

    @pl.when(ki < qi)             # strictly-past tiles: fully unmasked
    def _():
        flash_update(False)

    @pl.when(ki == qi)            # diagonal tile: mask, then finalize this q tile
    def _():
        flash_update(True)

        # ---- epilogue: normalize, head-batched projection, residual, MLP ----
        y = acc_scr[...] * pl.reciprocal(l_scr[...], approx=True)  # (H, tq, hd)
        yh = jnp.einsum('hqd,hdc->hqc', y.astype(jnp.bfloat16),
                        w_projh_ref[...], preferred_element_type=jnp.float32)
        yp = jnp.sum(yh, axis=0) + b_proj_ref[...]                  # (tq, C)
        x1 = x_ref[0].astype(jnp.float32) + yp                      # residual 1
        h2 = _layernorm(x1, ln2_g_ref[...], ln2_b_ref[...])
        m1 = jnp.dot(h2.astype(jnp.bfloat16), w1_ref[...],
                     preferred_element_type=jnp.float32) + b1_ref[...]
        m1 = _gelu_exact(m1)
        m2 = jnp.dot(m1.astype(jnp.bfloat16), w2_ref[...],
                     preferred_element_type=jnp.float32) + b2_ref[...]
        o_ref[0] = (x1 + m2).astype(o_ref.dtype)                    # residual 2


def _vmem_limit_bytes(est_bytes):
    # Double-buffered pipeline blocks + headroom, clamped to a sane range.
    return int(min(max(2 * est_bytes + (8 << 20), 32 << 20), 100 << 20))


def transformer_block(x, params, n_head, tq=None):
    (ln1_g, ln1_b, w_qkv, b_qkv, w_projh, b_proj,
     ln2_g, ln2_b, w1, b1, w2, b2) = params
    B, T, C = x.shape
    assert C % n_head == 0
    hd = C // n_head

    if tq is None:
        tq = 256 if T % 256 == 0 else (128 if T % 128 == 0 else T)
    assert T % tq == 0, "sequence length must be divisible by the q tile"
    tk = tq          # causal tile-skip + diagonal-only masking assume tk == tq
    tt = tq
    n_q, n_k, n_t = T // tq, T // tk, T // tt
    f32, bf16 = 4, 2

    # ---------------- Pass 1: LN1 + fused QKV (head-major) -------------------
    est1 = (tt * C * f32 + C * 3 * C * bf16 + 5 * C * f32
            + 3 * tt * C * bf16)
    const2 = lambda b, ti: (0, 0)

    q_hm, kT_hm, v_hm = pl.pallas_call(
        functools.partial(qkv_kernel, n_head=n_head),
        out_shape=(jax.ShapeDtypeStruct((B, n_head, T, hd), jnp.bfloat16),
                   jax.ShapeDtypeStruct((B, n_head, hd, T), jnp.bfloat16),
                   jax.ShapeDtypeStruct((B, n_head, T, hd), jnp.bfloat16)),
        grid_spec=pltpu.PrefetchScalarGridSpec(
            num_scalar_prefetch=0,
            grid=(B, n_t),
            in_specs=[
                pl.BlockSpec((1, tt, C), lambda b, ti: (b, ti, 0)),
                pl.BlockSpec(ln1_g.shape, const2),
                pl.BlockSpec(ln1_b.shape, const2),
                pl.BlockSpec(w_qkv.shape, const2),
                pl.BlockSpec(b_qkv.shape, const2),
            ],
            out_specs=[
                pl.BlockSpec((1, n_head, tt, hd), lambda b, ti: (b, 0, ti, 0)),
                pl.BlockSpec((1, n_head, hd, tt), lambda b, ti: (b, 0, 0, ti)),
                pl.BlockSpec((1, n_head, tt, hd), lambda b, ti: (b, 0, ti, 0)),
            ]),
        compiler_params=pltpu.CompilerParams(
            dimension_semantics=("parallel", "parallel"),
            vmem_limit_bytes=_vmem_limit_bytes(est1)),
    )(x, ln1_g, ln1_b, w_qkv, b_qkv)

    # -------- Pass 2: flash attention (causal k-tiling) + proj + MLP ---------
    est2 = (tq * C * f32 + 3 * tq * C * bf16 + C * C * bf16 + 8 * C * C * bf16
            + 10 * C * f32 + tq * C * x.dtype.itemsize
            + n_head * tq * (hd + 2 * 128) * f32)
    const3 = lambda b, qi, ki: (0, 0)

    out = pl.pallas_call(
        functools.partial(attn_mlp_kernel, tq=tq, tk=tk),
        out_shape=jax.ShapeDtypeStruct((B, T, C), x.dtype),
        grid_spec=pltpu.PrefetchScalarGridSpec(
            num_scalar_prefetch=0,
            grid=(B, n_q, n_k),
            in_specs=[
                pl.BlockSpec((1, tq, C), lambda b, qi, ki: (b, qi, 0)),
                pl.BlockSpec((1, n_head, tq, hd),
                             lambda b, qi, ki: (b, 0, qi, 0)),
                # clamp ki so skipped (future) k-tiles never trigger a new DMA
                pl.BlockSpec((1, n_head, hd, tk),
                             lambda b, qi, ki: (b, 0, 0, jnp.minimum(ki, qi))),
                pl.BlockSpec((1, n_head, tk, hd),
                             lambda b, qi, ki: (b, 0, jnp.minimum(ki, qi), 0)),
                pl.BlockSpec(w_projh.shape, lambda b, qi, ki: (0, 0, 0)),
                pl.BlockSpec(b_proj.shape, const3),
                pl.BlockSpec(ln2_g.shape, const3),
                pl.BlockSpec(ln2_b.shape, const3),
                pl.BlockSpec(w1.shape, const3),
                pl.BlockSpec(b1.shape, const3),
                pl.BlockSpec(w2.shape, const3),
                pl.BlockSpec(b2.shape, const3),
            ],
            out_specs=pl.BlockSpec((1, tq, C), lambda b, qi, ki: (b, qi, 0)),
            scratch_shapes=[
                pltpu.VMEM((n_head, tq, 1), jnp.float32),    # running max
                pltpu.VMEM((n_head, tq, 1), jnp.float32),    # running sum
                pltpu.VMEM((n_head, tq, hd), jnp.float32),   # PV accumulator
            ]),
        compiler_params=pltpu.CompilerParams(
            dimension_semantics=("parallel", "parallel", "arbitrary"),
            vmem_limit_bytes=_vmem_limit_bytes(est2)),
    )(x, q_hm, kT_hm, v_hm, w_projh, b_proj, ln2_g, ln2_b, w1, b1, w2, b2)

    return out


# --------------------------------------------------------------------------
# Parameter construction / packing and a pure-JAX reference.
# --------------------------------------------------------------------------
def init_raw_params(key, n_embd):
    C = n_embd
    keys = jax.random.split(key, 12)
    std = 0.02

    def lin(kw, kb, d_in, d_out):
        w = jax.random.normal(kw, (d_in, d_out), jnp.float32) * std
        b = jax.random.normal(kb, (1, d_out), jnp.float32) * std
        return w, b

    wq, bq = lin(keys[0], keys[1], C, C)
    wk, bk = lin(keys[2], keys[3], C, C)
    wv, bv = lin(keys[4], keys[5], C, C)
    wp, bp = lin(keys[6], keys[7], C, C)
    w1, b1 = lin(keys[8], keys[9], C, 4 * C)
    w2, b2 = lin(keys[10], keys[11], 4 * C, C)

    ln1_g = jnp.ones((1, C), jnp.float32)
    ln1_b = jnp.zeros((1, C), jnp.float32)
    ln2_g = jnp.ones((1, C), jnp.float32)
    ln2_b = jnp.zeros((1, C), jnp.float32)

    return (ln1_g, ln1_b, wq, bq, wk, bk, wv, bv, wp, bp,
            ln2_g, ln2_b, w1, b1, w2, b2)


def pack_params(raw, n_head):
    """Fuse Q/K/V, fold 1/sqrt(hd) into Q, head-major proj, cast weights bf16."""
    (ln1_g, ln1_b, wq, bq, wk, bk, wv, bv, wp, bp,
     ln2_g, ln2_b, w1, b1, w2, b2) = raw
    C = wq.shape[0]
    hd = C // n_head
    scale = 1.0 / math.sqrt(hd)
    w_qkv = jnp.concatenate([wq * scale, wk, wv], axis=1).astype(jnp.bfloat16)
    b_qkv = jnp.concatenate([bq * scale, bk, bv], axis=1)          # f32 biases
    w_projh = wp.reshape(n_head, hd, C).astype(jnp.bfloat16)       # (H, hd, C)
    return (ln1_g, ln1_b, w_qkv, b_qkv, w_projh, bp,
            ln2_g, ln2_b,
            w1.astype(jnp.bfloat16), b1, w2.astype(jnp.bfloat16), b2)


def reference_block(x, raw, n_head):
    """Pure-JAX reference mirroring the PyTorch forward (eval mode).

    Weights are rounded to bf16 (and back) to mirror the kernel's bf16 weight
    storage; activation math stays in f32.
    """
    (ln1_g, ln1_b, wq, bq, wk, bk, wv, bv, wp, bp,
     ln2_g, ln2_b, w1, b1, w2, b2) = raw
    rnd = lambda w: w.astype(jnp.bfloat16).astype(jnp.float32)
    wq, wk, wv, wp, w1, w2 = map(rnd, (wq, wk, wv, wp, w1, w2))
    B, T, C = x.shape
    hd = C // n_head

    def ln(z, g, b):
        mu = jnp.mean(z, -1, keepdims=True)
        var = jnp.mean((z - mu) ** 2, -1, keepdims=True)
        return (z - mu) / jnp.sqrt(var + 1e-5) * g + b

    h = ln(x, ln1_g, ln1_b)
    q = (h @ wq + bq).reshape(B, T, n_head, hd).transpose(0, 2, 1, 3)
    k = (h @ wk + bk).reshape(B, T, n_head, hd).transpose(0, 2, 1, 3)
    v = (h @ wv + bv).reshape(B, T, n_head, hd).transpose(0, 2, 1, 3)
    att = jnp.einsum('bhqd,bhkd->bhqk', q, k) / math.sqrt(hd)
    mask = jnp.tril(jnp.ones((T, T), bool))
    att = jnp.where(mask, att, -jnp.inf)
    att = jax.nn.softmax(att, axis=-1)
    y = jnp.einsum('bhqk,bhkd->bhqd', att, v).transpose(0, 2, 1, 3).reshape(B, T, C)
    x = x + (y @ wp + bp)
    h2 = ln(x, ln2_g, ln2_b)
    m = h2 @ w1 + b1
    m = 0.5 * m * (1.0 + jax.lax.erf(m / math.sqrt(2.0)))
    m = m @ w2 + b2
    return x + m


if __name__ == "__main__":
    # Small but tiling-friendly shapes: multiple q/k tiles exercise the causal
    # flash path (q-tile 0 touches only k-tile 0; q-tile 1 touches both; the
    # mask is applied only on the diagonal tile).
    B, T, C, H = 2, 256, 128, 4
    TQ = 128

    key = jax.random.PRNGKey(0)
    kx, kp = jax.random.split(key)
    x = jax.random.normal(kx, (B, T, C), jnp.float32)
    raw = init_raw_params(kp, C)
    params = pack_params(raw, H)

    out = transformer_block(x, params, H, tq=TQ)
    out = jax.block_until_ready(out)

    ref = reference_block(x, raw, H)
    assert out.shape == (B, T, C)
    err = float(jnp.max(jnp.abs(out - ref)))
    # bf16 matmul operands (deliberate) => small deviation vs. the f32 reference.
    assert jnp.allclose(out, ref, atol=2e-2, rtol=2e-2), f"max abs err {err}"

    print("KERNEL_OK")
</pallas_src>

<mosaic_0001>
module attributes {stable_mosaic.version = 11 : i64} {
  func.func @qkv_kernel(%arg0: i32, %arg1: i32, %arg2: memref<1x128x128xf32, #tpu.memory_space<vmem>>, %arg3: memref<1x128xf32, #tpu.memory_space<vmem>>, %arg4: memref<1x128xf32, #tpu.memory_space<vmem>>, %arg5: memref<128x384xbf16, #tpu.memory_space<vmem>>, %arg6: memref<1x384xf32, #tpu.memory_space<vmem>>, %arg7: memref<1x4x128x32xbf16, #tpu.memory_space<vmem>>, %arg8: memref<1x4x32x128xbf16, #tpu.memory_space<vmem>>, %arg9: memref<1x4x128x32xbf16, #tpu.memory_space<vmem>>) attributes {dimension_semantics = [#tpu.dimension_semantics<parallel>, #tpu.dimension_semantics<parallel>], iteration_bounds = array<i64: 2, 2>, scalar_prefetch = 0 : i64, scratch_operands = 0 : i64, tpu.core_type = #tpu.core_type<tc>, window_params = [{transform_indices = @transform_0, window_bounds = array<i64: 1, 128, 128>}, {pipeline_mode = #tpu.pipeline_mode<synchronous>, transform_indices = @transform_1, window_bounds = array<i64: 1, 128>}, {pipeline_mode = #tpu.pipeline_mode<synchronous>, transform_indices = @transform_2, window_bounds = array<i64: 1, 128>}, {pipeline_mode = #tpu.pipeline_mode<synchronous>, transform_indices = @transform_3, window_bounds = array<i64: 128, 384>}, {pipeline_mode = #tpu.pipeline_mode<synchronous>, transform_indices = @transform_4, window_bounds = array<i64: 1, 384>}, {transform_indices = @transform_5, window_bounds = array<i64: 1, 4, 128, 32>}, {transform_indices = @transform_6, window_bounds = array<i64: 1, 4, 32, 128>}, {transform_indices = @transform_7, window_bounds = array<i64: 1, 4, 128, 32>}]} {
    %c0 = arith.constant 0 : index
    %c0_0 = arith.constant 0 : index
    %c0_1 = arith.constant 0 : index
    %0 = vector.load %arg2[%c0, %c0_0, %c0_1] : memref<1x128x128xf32, #tpu.memory_space<vmem>>, vector<1x128x128xf32>
    %1 = vector.shape_cast %0 : vector<1x128x128xf32> to vector<128x128xf32>
    %c0_2 = arith.constant 0 : index
    %c0_3 = arith.constant 0 : index
    %2 = vector.load %arg3[%c0_2, %c0_3] : memref<1x128xf32, #tpu.memory_space<vmem>>, vector<1x128xf32>
    %c0_4 = arith.constant 0 : index
    %c0_5 = arith.constant 0 : index
    %3 = vector.load %arg4[%c0_4, %c0_5] : memref<1x128xf32, #tpu.memory_space<vmem>>, vector<1x128xf32>
    %cst = arith.constant dense<0.000000e+00> : vector<128xf32>
    %4 = vector.multi_reduction <add>, %1, %cst [1] : vector<128x128xf32> to vector<128xf32>
    %5 = vector.shape_cast %4 : vector<128xf32> to vector<128x1xf32>
    %cst_6 = arith.constant 1.280000e+02 : f32
    %6 = vector.broadcast %cst_6 : f32 to vector<128x1xf32>
    %7 = arith.divf %5, %6 : vector<128x1xf32>
    %8 = vector.broadcast %7 : vector<128x1xf32> to vector<128x128xf32>
    %9 = arith.subf %1, %8 : vector<128x128xf32>
    %10 = arith.mulf %9, %9 : vector<128x128xf32>
    %cst_7 = arith.constant dense<0.000000e+00> : vector<128xf32>
    %11 = vector.multi_reduction <add>, %10, %cst_7 [1] : vector<128x128xf32> to vector<128xf32>
    %12 = vector.shape_cast %11 : vector<128xf32> to vector<128x1xf32>
    %cst_8 = arith.constant 1.280000e+02 : f32
    %13 = vector.broadcast %cst_8 : f32 to vector<128x1xf32>
    %14 = arith.divf %12, %13 : vector<128x1xf32>
    %15 = vector.broadcast %7 : vector<128x1xf32> to vector<128x128xf32>
    %16 = arith.subf %1, %15 : vector<128x128xf32>
    %cst_9 = arith.constant 9.99999974E-6 : f32
    %17 = vector.broadcast %cst_9 : f32 to vector<128x1xf32>
    %18 = arith.addf %14, %17 : vector<128x1xf32>
    %19 = math.rsqrt %18 : vector<128x1xf32>
    %20 = vector.broadcast %19 : vector<128x1xf32> to vector<128x128xf32>
    %21 = arith.mulf %16, %20 : vector<128x128xf32>
    %22 = vector.broadcast %2 : vector<1x128xf32> to vector<128x128xf32>
    %23 = arith.mulf %21, %22 : vector<128x128xf32>
    %24 = vector.broadcast %3 : vector<1x128xf32> to vector<128x128xf32>
    %25 = arith.addf %23, %24 : vector<128x128xf32>
    %26 = arith.truncf %25 : vector<128x128xf32> to vector<128x128xbf16>
    %c0_10 = arith.constant 0 : index
    %c0_11 = arith.constant 0 : index
    %27 = vector.load %arg5[%c0_10, %c0_11] : memref<128x384xbf16, #tpu.memory_space<vmem>>, vector<128x384xbf16>
    %cst_12 = arith.constant dense<0.000000e+00> : vector<128x384xf32>
    %28 = tpu.matmul %26, %27, %cst_12 {dimension_numbers = #tpu.dot_dimension_numbers<[1], [0], [0], [1], [0, 0, 1, 1], [], []>} : vector<128x128xbf16>, vector<128x384xbf16>, vector<128x384xf32> -> vector<128x384xf32>
    %c0_13 = arith.constant 0 : index
    %c0_14 = arith.constant 0 : index
    %29 = vector.load %arg6[%c0_13, %c0_14] : memref<1x384xf32, #tpu.memory_space<vmem>>, vector<1x384xf32>
    %30 = vector.broadcast %29 : vector<1x384xf32> to vector<128x384xf32>
    %31 = arith.addf %28, %30 : vector<128x384xf32>
    %32 = vector.extract_strided_slice %31 {offsets = [0, 0], sizes = [128, 32], strides = [1, 1]} : vector<128x384xf32> to vector<128x32xf32>
    %33 = arith.truncf %32 : vector<128x32xf32> to vector<128x32xbf16>
    %c0_15 = arith.constant 0 : index
    %c0_16 = arith.constant 0 : index
    %c0_17 = arith.constant 0 : index
    %c0_18 = arith.constant 0 : index
    %34 = vector.load %arg7[%c0_15, %c0_16, %c0_17, %c0_18] : memref<1x4x128x32xbf16, #tpu.memory_space<vmem>>, vector<1x1x128x32xbf16>
    %35 = vector.shape_cast %34 : vector<1x1x128x32xbf16> to vector<128x32xbf16>
    %36 = vector.shape_cast %33 : vector<128x32xbf16> to vector<1x1x128x32xbf16>
    tpu.vector_store %arg7[%c0_15, %c0_16, %c0_17, %c0_18], %36 {strides = array<i32>} : memref<1x4x128x32xbf16, #tpu.memory_space<vmem>>, vector<1x1x128x32xbf16>,
    %37 = vector.extract_strided_slice %31 {offsets = [0, 128], sizes = [128, 32], strides = [1, 1]} : vector<128x384xf32> to vector<128x32xf32>
    %38 = tpu.transpose %37, [1, 0] : vector<128x32xf32> -> vector<32x128xf32>
    %39 = arith.truncf %38 : vector<32x128xf32> to vector<32x128xbf16>
    %c0_19 = arith.constant 0 : index
    %c0_20 = arith.constant 0 : index
    %c0_21 = arith.constant 0 : index
    %c0_22 = arith.constant 0 : index
    %40 = vector.load %arg8[%c0_19, %c0_20, %c0_21, %c0_22] : memref<1x4x32x128xbf16, #tpu.memory_space<vmem>>, vector<1x1x32x128xbf16>
    %41 = vector.shape_cast %40 : vector<1x1x32x128xbf16> to vector<32x128xbf16>
    %42 = vector.shape_cast %39 : vector<32x128xbf16> to vector<1x1x32x128xbf16>
    tpu.vector_store %arg8[%c0_19, %c0_20, %c0_21, %c0_22], %42 {strides = array<i32>} : memref<1x4x32x128xbf16, #tpu.memory_space<vmem>>, vector<1x1x32x128xbf16>,
    %43 = vector.extract_strided_slice %31 {offsets = [0, 256], sizes = [128, 32], strides = [1, 1]} : vector<128x384xf32> to vector<128x32xf32>
    %44 = arith.truncf %43 : vector<128x32xf32> to vector<128x32xbf16>
    %c0_23 = arith.constant 0 : index
    %c0_24 = arith.constant 0 : index
    %c0_25 = arith.constant 0 : index
    %c0_26 = arith.constant 0 : index
    %45 = vector.load %arg9[%c0_23, %c0_24, %c0_25, %c0_26] : memref<1x4x128x32xbf16, #tpu.memory_space<vmem>>, vector<1x1x128x32xbf16>
    %46 = vector.shape_cast %45 : vector<1x1x128x32xbf16> to vector<128x32xbf16>
    %47 = vector.shape_cast %44 : vector<128x32xbf16> to vector<1x1x128x32xbf16>
    tpu.vector_store %arg9[%c0_23, %c0_24, %c0_25, %c0_26], %47 {strides = array<i32>} : memref<1x4x128x32xbf16, #tpu.memory_space<vmem>>, vector<1x1x128x32xbf16>,
    %48 = vector.extract_strided_slice %31 {offsets = [0, 32], sizes = [128, 32], strides = [1, 1]} : vector<128x384xf32> to vector<128x32xf32>
    %49 = arith.truncf %48 : vector<128x32xf32> to vector<128x32xbf16>
    %c0_27 = arith.constant 0 : index
    %c1 = arith.constant 1 : index
    %c0_28 = arith.constant 0 : index
    %c0_29 = arith.constant 0 : index
    %50 = vector.load %arg7[%c0_27, %c1, %c0_28, %c0_29] : memref<1x4x128x32xbf16, #tpu.memory_space<vmem>>, vector<1x1x128x32xbf16>
    %51 = vector.shape_cast %50 : vector<1x1x128x32xbf16> to vector<128x32xbf16>
    %52 = vector.shape_cast %49 : vector<128x32xbf16> to vector<1x1x128x32xbf16>
    tpu.vector_store %arg7[%c0_27, %c1, %c0_28, %c0_29], %52 {strides = array<i32>} : memref<1x4x128x32xbf16, #tpu.memory_space<vmem>>, vector<1x1x128x32xbf16>,
    %53 = vector.extract_strided_slice %31 {offsets = [0, 160], sizes = [128, 32], strides = [1, 1]} : vector<128x384xf32> to vector<128x32xf32>
    %54 = tpu.transpose %53, [1, 0] : vector<128x32xf32> -> vector<32x128xf32>
    %55 = arith.truncf %54 : vector<32x128xf32> to vector<32x128xbf16>
    %c0_30 = arith.constant 0 : index
    %c1_31 = arith.constant 1 : index
    %c0_32 = arith.constant 0 : index
    %c0_33 = arith.constant 0 : index
    %56 = vector.load %arg8[%c0_30, %c1_31, %c0_32, %c0_33] : memref<1x4x32x128xbf16, #tpu.memory_space<vmem>>, vector<1x1x32x128xbf16>
    %57 = vector.shape_cast %56 : vector<1x1x32x128xbf16> to vector<32x128xbf16>
    %58 = vector.shape_cast %55 : vector<32x128xbf16> to vector<1x1x32x128xbf16>
    tpu.vector_store %arg8[%c0_30, %c1_31, %c0_32, %c0_33], %58 {strides = array<i32>} : memref<1x4x32x128xbf16, #tpu.memory_space<vmem>>, vector<1x1x32x128xbf16>,
    %59 = vector.extract_strided_slice %31 {offsets = [0, 288], sizes = [128, 32], strides = [1, 1]} : vector<128x384xf32> to vector<128x32xf32>
    %60 = arith.truncf %59 : vector<128x32xf32> to vector<128x32xbf16>
    %c0_34 = arith.constant 0 : index
    %c1_35 = arith.constant 1 : index
    %c0_36 = arith.constant 0 : index
    %c0_37 = arith.constant 0 : index
    %61 = vector.load %arg9[%c0_34, %c1_35, %c0_36, %c0_37] : memref<1x4x128x32xbf16, #tpu.memory_space<vmem>>, vector<1x1x128x32xbf16>
    %62 = vector.shape_cast %61 : vector<1x1x128x32xbf16> to vector<128x32xbf16>
    %63 = vector.shape_cast %60 : vector<128x32xbf16> to vector<1x1x128x32xbf16>
    tpu.vector_store %arg9[%c0_34, %c1_35, %c0_36, %c0_37], %63 {strides = array<i32>} : memref<1x4x128x32xbf16, #tpu.memory_space<vmem>>, vector<1x1x128x32xbf16>,
    %64 = vector.extract_strided_slice %31 {offsets = [0, 64], sizes = [128, 32], strides = [1, 1]} : vector<128x384xf32> to vector<128x32xf32>
    %65 = arith.truncf %64 : vector<128x32xf32> to vector<128x32xbf16>
    %c0_38 = arith.constant 0 : index
    %c2 = arith.constant 2 : index
    %c0_39 = arith.constant 0 : index
    %c0_40 = arith.constant 0 : index
    %66 = vector.load %arg7[%c0_38, %c2, %c0_39, %c0_40] : memref<1x4x128x32xbf16, #tpu.memory_space<vmem>>, vector<1x1x128x32xbf16>
    %67 = vector.shape_cast %66 : vector<1x1x128x32xbf16> to vector<128x32xbf16>
    %68 = vector.shape_cast %65 : vector<128x32xbf16> to vector<1x1x128x32xbf16>
    tpu.vector_store %arg7[%c0_38, %c2, %c0_39, %c0_40], %68 {strides = array<i32>} : memref<1x4x128x32xbf16, #tpu.memory_space<vmem>>, vector<1x1x128x32xbf16>,
    %69 = vector.extract_strided_slice %31 {offsets = [0, 192], sizes = [128, 32], strides = [1, 1]} : vector<128x384xf32> to vector<128x32xf32>
    %70 = tpu.transpose %69, [1, 0] : vector<128x32xf32> -> vector<32x128xf32>
    %71 = arith.truncf %70 : vector<32x128xf32> to vector<32x128xbf16>
    %c0_41 = arith.constant 0 : index
    %c2_42 = arith.constant 2 : index
    %c0_43 = arith.constant 0 : index
    %c0_44 = arith.constant 0 : index
    %72 = vector.load %arg8[%c0_41, %c2_42, %c0_43, %c0_44] : memref<1x4x32x128xbf16, #tpu.memory_space<vmem>>, vector<1x1x32x128xbf16>
    %73 = vector.shape_cast %72 : vector<1x1x32x128xbf16> to vector<32x128xbf16>
    %74 = vector.shape_cast %71 : vector<32x128xbf16> to vector<1x1x32x128xbf16>
    tpu.vector_store %arg8[%c0_41, %c2_42, %c0_43, %c0_44], %74 {strides = array<i32>} : memref<1x4x32x128xbf16, #tpu.memory_space<vmem>>, vector<1x1x32x128xbf16>,
    %75 = vector.extract_strided_slice %31 {offsets = [0, 320], sizes = [128, 32], strides = [1, 1]} : vector<128x384xf32> to vector<128x32xf32>
    %76 = arith.truncf %75 : vector<128x32xf32> to vector<128x32xbf16>
    %c0_45 = arith.constant 0 : index
    %c2_46 = arith.constant 2 : index
    %c0_47 = arith.constant 0 : index
    %c0_48 = arith.constant 0 : index
    %77 = vector.load %arg9[%c0_45, %c2_46, %c0_47, %c0_48] : memref<1x4x128x32xbf16, #tpu.memory_space<vmem>>, vector<1x1x128x32xbf16>
    %78 = vector.shape_cast %77 : vector<1x1x128x32xbf16> to vector<128x32xbf16>
    %79 = vector.shape_cast %76 : vector<128x32xbf16> to vector<1x1x128x32xbf16>
    tpu.vector_store %arg9[%c0_45, %c2_46, %c0_47, %c0_48], %79 {strides = array<i32>} : memref<1x4x128x32xbf16, #tpu.memory_space<vmem>>, vector<1x1x128x32xbf16>,
    %80 = vector.extract_strided_slice %31 {offsets = [0, 96], sizes = [128, 32], strides = [1, 1]} : vector<128x384xf32> to vector<128x32xf32>
    %81 = arith.truncf %80 : vector<128x32xf32> to vector<128x32xbf16>
    %c0_49 = arith.constant 0 : index
    %c3 = arith.constant 3 : index
    %c0_50 = arith.constant 0 : index
    %c0_51 = arith.constant 0 : index
    %82 = vector.load %arg7[%c0_49, %c3, %c0_50, %c0_51] : memref<1x4x128x32xbf16, #tpu.memory_space<vmem>>, vector<1x1x128x32xbf16>
    %83 = vector.shape_cast %82 : vector<1x1x128x32xbf16> to vector<128x32xbf16>
    %84 = vector.shape_cast %81 : vector<128x32xbf16> to vector<1x1x128x32xbf16>
    tpu.vector_store %arg7[%c0_49, %c3, %c0_50, %c0_51], %84 {strides = array<i32>} : memref<1x4x128x32xbf16, #tpu.memory_space<vmem>>, vector<1x1x128x32xbf16>,
    %85 = vector.extract_strided_slice %31 {offsets = [0, 224], sizes = [128, 32], strides = [1, 1]} : vector<128x384xf32> to vector<128x32xf32>
    %86 = tpu.transpose %85, [1, 0] : vector<128x32xf32> -> vector<32x128xf32>
    %87 = arith.truncf %86 : vector<32x128xf32> to vector<32x128xbf16>
    %c0_52 = arith.constant 0 : index
    %c3_53 = arith.constant 3 : index
    %c0_54 = arith.constant 0 : index
    %c0_55 = arith.constant 0 : index
    %88 = vector.load %arg8[%c0_52, %c3_53, %c0_54, %c0_55] : memref<1x4x32x128xbf16, #tpu.memory_space<vmem>>, vector<1x1x32x128xbf16>
    %89 = vector.shape_cast %88 : vector<1x1x32x128xbf16> to vector<32x128xbf16>
    %90 = vector.shape_cast %87 : vector<32x128xbf16> to vector<1x1x32x128xbf16>
    tpu.vector_store %arg8[%c0_52, %c3_53, %c0_54, %c0_55], %90 {strides = array<i32>} : memref<1x4x32x128xbf16, #tpu.memory_space<vmem>>, vector<1x1x32x128xbf16>,
    %91 = vector.extract_strided_slice %31 {offsets = [0, 352], sizes = [128, 32], strides = [1, 1]} : vector<128x384xf32> to vector<128x32xf32>
    %92 = arith.truncf %91 : vector<128x32xf32> to vector<128x32xbf16>
    %c0_56 = arith.constant 0 : index
    %c3_57 = arith.constant 3 : index
    %c0_58 = arith.constant 0 : index
    %c0_59 = arith.constant 0 : index
    %93 = vector.load %arg9[%c0_56, %c3_57, %c0_58, %c0_59] : memref<1x4x128x32xbf16, #tpu.memory_space<vmem>>, vector<1x1x128x32xbf16>
    %94 = vector.shape_cast %93 : vector<1x1x128x32xbf16> to vector<128x32xbf16>
    %95 = vector.shape_cast %92 : vector<128x32xbf16> to vector<1x1x128x32xbf16>
    tpu.vector_store %arg9[%c0_56, %c3_57, %c0_58, %c0_59], %95 {strides = array<i32>} : memref<1x4x128x32xbf16, #tpu.memory_space<vmem>>, vector<1x1x128x32xbf16>,
    return
  }
  func.func @transform_0(%arg0: i32, %arg1: i32) -> (i32, i32, i32) {
    %c0_i32 = arith.constant 0 : i32
    %c0_i32_0 = arith.constant 0 : i32
    return %arg0, %arg1, %c0_i32 : i32, i32, i32
  }
  func.func @transform_1(%arg0: i32, %arg1: i32) -> (i32, i32) {
    %c0_i32 = arith.constant 0 : i32
    %c0_i32_0 = arith.constant 0 : i32
    %c0_i32_1 = arith.constant 0 : i32
    return %c0_i32, %c0_i32_0 : i32, i32
  }
  func.func @transform_2(%arg0: i32, %arg1: i32) -> (i32, i32) {
    %c0_i32 = arith.constant 0 : i32
    %c0_i32_0 = arith.constant 0 : i32
    %c0_i32_1 = arith.constant 0 : i32
    return %c0_i32, %c0_i32_0 : i32, i32
  }
  func.func @transform_3(%arg0: i32, %arg1: i32) -> (i32, i32) {
    %c0_i32 = arith.constant 0 : i32
    %c0_i32_0 = arith.constant 0 : i32
    %c0_i32_1 = arith.constant 0 : i32
    return %c0_i32, %c0_i32_0 : i32, i32
  }
  func.func @transform_4(%arg0: i32, %arg1: i32) -> (i32, i32) {
    %c0_i32 = arith.constant 0 : i32
    %c0_i32_0 = arith.constant 0 : i32
    %c0_i32_1 = arith.constant 0 : i32
    return %c0_i32, %c0_i32_0 : i32, i32
  }
  func.func @transform_5(%arg0: i32, %arg1: i32) -> (i32, i32, i32, i32) {
    %c0_i32 = arith.constant 0 : i32
    %c0_i32_0 = arith.constant 0 : i32
    %c0_i32_1 = arith.constant 0 : i32
    return %arg0, %c0_i32, %arg1, %c0_i32_0 : i32, i32, i32, i32
  }
  func.func @transform_6(%arg0: i32, %arg1: i32) -> (i32, i32, i32, i32) {
    %c0_i32 = arith.constant 0 : i32
    %c0_i32_0 = arith.constant 0 : i32
    %c0_i32_1 = arith.constant 0 : i32
    return %arg0, %c0_i32, %c0_i32_0, %arg1 : i32, i32, i32, i32
  }
  func.func @transform_7(%arg0: i32, %arg1: i32) -> (i32, i32, i32, i32) {
    %c0_i32 = arith.constant 0 : i32
    %c0_i32_0 = arith.constant 0 : i32
    %c0_i32_1 = arith.constant 0 : i32
    return %arg0, %c0_i32, %arg1, %c0_i32_0 : i32, i32, i32, i32
  }
}

</mosaic_0001>

<bundles_post_ra>
// kernel: tpu_custom_call.1
= control target key start
LH: loop header
LB: loop body
LE: loop exit
PB: predicated region body
PF: predicated region fallthrough
CT: control target
= control target key end

     0   :  { %s4928_s0 = inlined_call_operand.hbm [shape: f32[2,256,128], index: 0, kind: input, shape index: {}]   ;;  %s4929_s1 = inlined_call_operand.vmem [shape: f32[1,128], index: 1, kind: input, shape index: {}]   ;;  %s4930_s2 = inlined_call_operand.vmem [shape: f32[1,128], index: 2, kind: input, shape index: {}]   ;;  %s4931_s3 = inlined_call_operand.hbm [shape: bf16[128,384], index: 3, kind: input, shape index: {}]   ;;  %s4932_s4 = inlined_call_operand.vmem [shape: f32[1,384], index: 4, kind: input, shape index: {}]   ;;  %s4933_s5 = inlined_call_operand.vmem [shape: bf16[2,4,256,32], index: 5, kind: output, shape index: {0}]   ;;  %s4934_s6 = inlined_call_operand.hbm [shape: bf16[2,4,32,256], index: 6, kind: output, shape index: {1}]   ;;  %s4935_s7 = inlined_call_operand.vmem [shape: bf16[2,4,256,32], index: 7, kind: output, shape index: {2}]  }
   0x1   :  { %4946 = sst [smem:[#allocation18_spill]] %s4931_s3 }
   0x2   :  { %4947 = sst [smem:[#allocation19_spill]] %s4933_s5 }
   0x3   :  { %4948 = sst [smem:[#allocation20_spill]] %s4934_s6 }
   0x4   :  { %4949 = sst [smem:[#allocation21_spill]] %s4935_s7 }
   0x5   :  { %13 = vsyncpa [#allocation3], 0 }
   0x6   :  { %15 = vsyncpa [#allocation3 + $0x1], 0 }
   0x7   :  { %16 = vsyncpa [#allocation6], 0 }
   0x8   :  { %17 = vsyncpa [#allocation4], 0 }
   0x9   :  { %19 = vsyncpa [#allocation4 + $0x1], 0  ;;  %s3540_s24 = smov 0   ;;  %s3542_s25 = smov 0  }
   0xa   :  { %s3544_s26 = smov 0   ;;  %s3546_s27 = smov 0  }
   0xb   :  { %s3548_s28 = smov 0   ;;  %s3550_s29 = smov 0  }
   0xc   :  { %s3552_s30 = smov 0   ;;  %s3554_s8 = smov 0  }
   0xd LB: > { %4950 = sst [smem:[#allocation13_spill]] %s3457_s24  ;;  %s2689_s9 = sadd.s32 4294967295, %s3485_s8   ;;  %s3485_s8 = sphi %s3554_s8, %s25_s8   ;;  %s3481_s30 = sphi %s3552_s30, %s4984_s30   ;;  %s3477_s29 = sphi %s3550_s29, %s4978_s29   ;;  %s3473_s28 = sphi %s3548_s28, %s4983_s28   ;;  %s3469_s27 = sphi %s3546_s27, %s4977_s27   ;;  %s3465_s26 = sphi %s3544_s26, %s4982_s26   ;;  %s3461_s25 = sphi %s3542_s25, %s4981_s25   ;;  %s3457_s24 = sphi %s3540_s24, %s4980_s24  }
   0xe   : > { %4951 = sst [smem:[#allocation14_spill]] %s3477_s29  ;;  %s2690_s10 = sadd.s32 4294967294, %s3485_s8  }
   0xf   : > { %p59_p0 = scmp.ne.s32.totalorder %s3461_s25, %s3457_s24  ;;  %p3584_p1 = scmp.eq.s32.totalorder %s2689_s9, 0 }
  0x10   : > { %p3588_p2 = scmp.eq.s32.totalorder %s2689_s9, 3  ;;  %p203_p3 = scmp.eq.s32.totalorder %s2690_s10, 3 }
  0x11   : > { %s4952_s11 = scalar_select %p3584_p1, 1, 0 }
  0x12   : > { %s4953_s12 = scalar_select %p3588_p2, 1, 0 }
  0x13   : > { %p3594_p4 = por %p3584_p1, %p59_p0  ;;  %p2691_p5 = scmp.ge.s32.totalorder %s3485_s8, 1 }
  0x14   : > { %p3599_p6 = por %p203_p3, %p59_p0  ;;  %p238_p7 = scmp.lt.s32.totalorder %s3485_s8, 5 }
  0x15   : > { %s4954_s13 = scalar_select %p3594_p4, 1, 0 }
  0x16   : > { %s4955_s14 = scalar_select %p3599_p6, 1, 0 }
  0x17   : > { %p3604_p8 = pnand %p2691_p5, %p238_p7  ;;  %s3487_s16 = smov [#allocation5]  }
  0x18   : > { %4956 = sst [smem:[#allocation15_spill]] %s4955_s14  ;;  %s256_s17 = sshll.u32 %s3487_s16, 4  ;;  %s257_s17 = int_to_ptr.vmem [resolvable:$true] %s256_s17 }
  0x19   : > { %s4957_s15 = scalar_select %p3604_p8, 1, 0 }
  0x1a   : > { %p3050_p9 = pneg %p3604_p8  ;;  %s4959_s3 = sld [smem:[#allocation18_spill]] }
  0x1c   : > { %p3612_p10 = pnand %p3050_p9, %p3584_p1 }
  0x1e   : > { %p3327_p12 = pneg %p3612_p10 }
  0x20   : > { %s3325_s21 = scalar_lea.hbm %s4959_s3, 3072 }
  0x21   : > { %p3326_p11 = scmp.ne.s32.totalorder %s4959_s3, %s3325_s21  ;;  %p3332_p3 = scmp.lt.u32.totalorder %s3325_s21, %s4959_s3 }
  0x23   : > { %p3328_p13 = pnand %p3327_p12, %p3326_p11 }
  0x25   : > { %p3329_p0 = pneg %p3328_p13 }
  0x27   : > { %p3334_p5 = pnand %p3332_p3, %p3329_p0 }
  0x29   : > { %3337 = shalt.err (!%p3334_p5)
}
  0x2a   : > { %s3338_s16 = scalar_lea.vmem %s257_s17, 3072  ;;  %p3346_p1 = scmp.lt.s32.totalorder %s257_s17, %s257_s17 }
  0x2b   : > { %p3339_p7 = scmp.ne.s32.totalorder %s257_s17, %s3338_s16  ;;  %p3347_p4 = scmp.lt.s32.totalorder %s3338_s16, %s3338_s16 }
  0x2d   : > { %p3341_p9 = pnand %p3339_p7, %p3327_p12  ;;  %p3348_p8 = por %p3347_p4, %p3346_p1 }
  0x2f   : > { %p3342_p6 = pneg %p3341_p9 }
  0x31   : > { %p3349_p2 = pnand %p3348_p8, %p3342_p6 }
  0x33   : > { %3352 = shalt.err (!%p3349_p2)
}
  0x34   : > { %s3488_s19 = smov 192   ;;  %s3489_s20 = smov 12  }
  0x35   : > { %3053 = dma.hbm_to_vmem [thread:$0]  (!%p3612_p10), %s4959_s3, 3072, %s257_s17, [#allocation6], %s3488_s19, %s3488_s19, %s3489_s20  }
  0x36   : > { %s34_s23 = sadd.s32 1, %s3477_s29  ;;  %s37_s9 = sadd.s32 1, %s3481_s30 }
  0x37   : > { %p35_p1 = scmp.ge.s32.totalorder %s34_s23, 2  ;;  %s46_s10 = sadd.s32 1, %s3465_s26 }
  0x38   : > { %p53_p2 = scmp.ne.s32.totalorder %s3465_s26, %s3461_s25  ;;  %p54_p4 = scmp.eq.s32.totalorder %s3485_s8, 0 }
  0x39   : > { %s4986_s23 = smov (%p35_p1, %s34_s23), 0  ;;  %s4988_s9 = smov (!%p35_p1, %s37_s9), %s3481_s30 }
  0x3a   : > { %4960 = sst [smem:[#allocation16_spill]] %s4986_s23  ;;  %s42_s16 = ssub.s32 %s3477_s29, %s4986_s23 }
  0x3b   : > { %p39_p6 = scmp.ge.s32.totalorder %s4988_s9, 2  ;;  %p4961_p8 = scmp.ne.s32.totalorder %s4953_s12, 0 }
  0x3c   : > { %p3649_p10 = por %p54_p4, %p53_p2  ;;  %p3063_p12 = scmp.lt.s32.totalorder %s3485_s8, 4 }
  0x3d   : > { %p3645_p11 = por %p4961_p8, %p53_p2  ;;  %s4990_s9 = smov (%p39_p6, %s4988_s9), 0 }
  0x3e   : > { %4964 = sst [smem:[#allocation17_spill]] %s4990_s9  ;;  %s273_s19 = sand.u32 1, %s3465_s26  }
  0x3f   : > { %s2695_s20 = sshll.u32 %s3477_s29, 4  ;;  %s41_s21 = ssub.s32 %s3481_s30, %s4990_s9 }
  0x40   : > { %s43_s22 = sor.u32 %s42_s16, %s41_s21  ;;  %s2694_s3 = sshll.u32 %s273_s19, 7 }
  0x41   : > { %p44_p13 = scmp.eq.s32.totalorder %s43_s22, 0  ;;  %s2696_s12 = sshll.u32 %s3481_s30, 5 }
  0x42   : > { %s277_s23 = scalar_lea.vmem [#allocation2], %s2694_s3  ;;  %s283_s7 = sadd.s32 %s2696_s12, %s2695_s20 }
  0x43   : > { %s286_s14 = sshll.u32 %s277_s23, 4  ;;  %s2697_s6 = sshll.u32 %s283_s7, 7  ;;  %s3664_s14 = int_to_ptr.vmem [resolvable:$true] %s286_s14 }
  0x44   : > { %s3662_s24 = scalar_select %p44_p13, %s3465_s26, %s46_s10  }
  0x45   : > { %p3670_p0 = pnand %p3063_p12, %p3649_p10  ;;  %s3677_s16 = scalar_lea.hbm %s4928_s0, %s2697_s6 }
  0x46   : > { %s3679_s3 = scalar_lea.sflag [#allocation3], %s273_s19  ;;  %s3353_s7 = scalar_lea.hbm %s3677_s16, 2048 }
  0x47   : > { %p3354_p3 = scmp.ne.s32.totalorder %s3677_s16, %s3353_s7  ;;  %p3355_p5 = pneg %p3670_p0 }
  0x48   : > { %s3358_s9 = scalar_lea.hbm %s4928_s0, 8192  ;;  %p3359_p1 = scmp.lt.u32.totalorder %s3677_s16, %s4928_s0 }
  0x49   : > { %p3356_p7 = pnand %p3355_p5, %p3354_p3  ;;  %p3360_p2 = scmp.lt.u32.totalorder %s3358_s9, %s3353_s7 }
  0x4a   : > { %p3362_p6 = scmp.lt.u32.totalorder %s3353_s7, %s3677_s16 }
  0x4b   : > { %p3357_p9 = pneg %p3356_p7  ;;  %p3361_p4 = por %p3360_p2, %p3359_p1 }
  0x4d   : > { %p3363_p8 = por %p3362_p6, %p3361_p4 }
  0x4f   : > { %p3364_p10 = pnand %p3363_p8, %p3357_p9 }
  0x51   : > { %3367 = shalt.err (!%p3364_p10)
}
  0x52   : > { %s3368_s17 = scalar_lea.vmem %s3664_s14, 2048  ;;  %s3490_s19 = smov [#allocation2]  }
  0x53   : > { %p3369_p12 = scmp.ne.s32.totalorder %s3664_s14, %s3368_s17  ;;  %s3373_s20 = sshll.u32 %s3490_s19, 4  ;;  %s3374_s20 = int_to_ptr.vmem [resolvable:$false] %s3373_s20 }
  0x54   : > { %s3375_s21 = scalar_lea.vmem %s3374_s20, 4096  ;;  %p3376_p7 = scmp.lt.s32.totalorder %s3664_s14, %s3374_s20 }
  0x55   : > { %p3371_p13 = pnand %p3369_p12, %p3355_p5  ;;  %p3377_p1 = scmp.lt.s32.totalorder %s3375_s21, %s3368_s17 }
  0x57   : > { %p3372_p3 = pneg %p3371_p13  ;;  %p3378_p2 = por %p3377_p1, %p3376_p7 }
  0x59   : > { %p3379_p4 = pnand %p3378_p2, %p3372_p3 }
  0x5b   : > { %3382 = shalt.err (!%p3379_p4)
}
  0x5c   : > { %s3491_s22 = smov 128   ;;  %s3492_s12 = smov 8  }
  0x5d   : > { %3057 = dma.hbm_to_vmem [thread:$0]  (!%p3670_p0), %s3677_s16, 2048, %s3664_s14, %s3679_s3, %s3491_s22, %s3491_s22, %s3492_s12  }
  0x5e   : > { %p4966_p5 = scmp.ne.s32.totalorder %s4957_s15, 0 }
  0x5f   : > { %s3710_s7 = sand.u32 (!%p4966_p5), 1, %s3461_s25   ;;  %p4967_p9 = scmp.ne.s32.totalorder (!%p4966_p5), %s4954_s13, 0 }
  0x60   : > { %298 = sbr.rel (%p4966_p5) target bundleno = 1340 (0x53c), region = 40  ;;  %s2699_s23 = sshll.u32 (!%p4966_p5), %s3710_s7, 7 }
  0x61   : > { %s301_s29 = scalar_lea.sflag (!%p4966_p5), [#allocation3], %s3710_s7  ;;  %s3714_s9 = scalar_lea.vmem (!%p4966_p5), [#allocation2], %s2699_s23 }
  0x67   : > { %3444 = dma.done.wait (%p4967_p9), %s301_s29, 2048  }
  0x68   : > { %3446 = vsyncadd (%p4967_p9), %s301_s29, 4294965248  ;;  %p4968_p0 = scmp.ne.s32.totalorder %s4952_s11, 0 }
  0x6a   : > { %3448 = dma.done.wait (%p4968_p0), [#allocation6], 3072  }
  0x6b   : > { %3450 = vsyncadd (%p4968_p0), [#allocation6], 4294964224  ;;  %v351_v0 = vld [vmem:[%s3714_s9] sm:$0xff]  ;;  %v353_v1 = vld [vmem:[%s3714_s9 + $0x10] sm:$0xff]  ;;  %s2701_s3 = sshll.u32 %s3710_s7, 8  ;;  %vm1049_vm0 = vcmask 257024  }
  0x6c   : > { %369 = vadd.xlane.f32.xlu0 %v351_v0  ;;  %373 = vadd.xlane.f32.xlu1 %v353_v1  ;;  %v352_v2 = vld [vmem:[%s3714_s9 + $0x8] sm:$0xff]  ;;  %v354_v3 = vld [vmem:[%s3714_s9 + $0x18] sm:$0xff]  ;;  %v355_v4 = vld [vmem:[%s3714_s9 + $0x20] sm:$0xff]  ;;  %s3918_s6 = scalar_lea.vmem [#allocation7], %s2701_s3  ;;  %s3494_s10 = smov 32  }
  0x6d   : > { %v356_v5 = vld [vmem:[%s3714_s9 + $0x28] sm:$0xff]  ;;  %v3731_v6 = vld [vmem:[%s3714_s9 + $0x30] sm:$0xff]  ;;  %v358_v7 = vld [vmem:[%s3714_s9 + $0x38] sm:$0xff]  ;;  %s3495_s17 = smov 96   ;;  %s3945_s19 = scalar_lea.vmem [#allocation9], %s2701_s3 }
  0x6e   : > { %v3735_v8 = vld [vmem:[%s3714_s9 + $0x40] sm:$0xff]  ;;  %v3738_v9 = vld [vmem:[%s3714_s9 + $0x48] sm:$0xff]  ;;  %v3744_v10 = vld [vmem:[%s3714_s9 + $0x50] sm:$0xff]  ;;  %s3496_s20 = smov 64   ;;  %s2702_s21 = sshll.u32 %s3710_s7, 6 }
  0x6f   : > { %v3747_v11 = vld [vmem:[%s3714_s9 + $0x58] sm:$0xff]  ;;  %v3752_v12 = vld [vmem:[%s3714_s9 + $0x60] sm:$0xff]  ;;  %v3755_v13 = vld [vmem:[%s3714_s9 + $0x68] sm:$0xff]  ;;  %s4691_s22 = scalar_lea.vmem [#allocation8], %s2702_s21  ;;  %s1912_s12 = scalar_lea.sflag [#allocation4], %s3710_s7 }
  0x70   : > { %371 = vadd.xlane.f32.xlu0 %v352_v2  ;;  %375 = vadd.xlane.f32.xlu1 %v354_v3  ;;  %v3760_v14 = vld [vmem:[%s3714_s9 + $0x70] sm:$0xff]  ;;  %v3763_v15 = vld [vmem:[%s3714_s9 + $0x78] sm:$0xff]  ;;  %v3263_v17 = vld [vmem:[#allocation5] ss:$12 sps:$4 sm:$0xff]   ;;  %s2889_s23 = sshll.u32 (%p3645_p11), %s3469_s27, 4  ;;  %s2890_s29 = sshll.u32 (%p3645_p11), %s3473_s28, 7 }
  0x71   : > { %v3261_v16 = vld [vmem:[#allocation5 + $0x4] ss:$12 sps:$4 sm:$0xff]   ;;  %v3264_v18 = vld [vmem:[#allocation5 + $0x1c] ss:$12 sps:$4 sm:$0xff]   ;;  %s1925_s9 = sadd.s32 (%p3645_p11), %s2890_s29, %s2889_s23  ;;  %s4969_s14 = sld [smem:[#allocation19_spill]] (%p3645_p11) }
  0x72   : > { %v3266_v19 = vld [vmem:[#allocation5 + $0x8] ss:$12 sps:$4 sm:$0xff]   ;;  %775 = vmatprep.subr.bf16.mxu0 %v3261_v16  ;;  %v3267_v58 = vld [vmem:[#allocation5 + $0x18] ss:$12 sps:$4 sm:$0xff]   ;;  %s2891_s5 = sshll.u32 (%p3645_p11), %s1925_s9, 2 }
  0x73   : > { %776 = vmatpush1.bf16.msra.mxu0 %v3263_v17  ;;  %3010 = vmatprep.subr.bf16.mxu1 %v3266_v19 }
  0x74   : > { %377 = vadd.xlane.f32.xlu0 %v355_v4  ;;  %379 = vadd.xlane.f32.xlu1 %v356_v5 }
  0x75   : > { %777 = vmatprep.subr.bf16.mxu0 %v3264_v18  ;;  %3011 = vmatpush3.bf16.msra.mxu1 %v3266_v19  ;;  %v3272_v18 = vld [vmem:[#allocation5 + $0x4c] ss:$12 sps:$4 sm:$0xff]  }
  0x76   : > { %v3274_v19 = vld [vmem:[#allocation5 + $0x38] ss:$12 sps:$4 sm:$0xff]  }
  0x77   : > { %778 = vmatpush1.bf16.msra.mxu0 %v3267_v58  ;;  %s4736_s15 = scalar_lea.vmem (%p3645_p11), %s4969_s14, %s2891_s5 }
  0x78   : > { %381 = vadd.xlane.f32.xlu0 %v3731_v6  ;;  %383 = vadd.xlane.f32.xlu1 %v358_v7 }
  0x7c   : > { %385 = vadd.xlane.f32.xlu0 %v3735_v8  ;;  %387 = vadd.xlane.f32.xlu1 %v3738_v9 }
  0x80   : > { %389 = vadd.xlane.f32.xlu0 %v3744_v10  ;;  %391 = vadd.xlane.f32.xlu1 %v3747_v11 }
  0x84   : > { %393 = vadd.xlane.f32.xlu0 %v3752_v12  ;;  %395 = vadd.xlane.f32.xlu1 %v3755_v13 }
  0x88   : > { %397 = vadd.xlane.f32.xlu0 %v3760_v14  ;;  %399 = vadd.xlane.f32.xlu1 %v3763_v15 }
  0xf9   : > { %v370_v20 = vpop.xlane.xlu0 %369  ;;  %v374_v21 = vpop.xlane.xlu1 %373 }
  0xfa   : > { %v402_v22 = vmul.f32 0.0078125, %v370_v20  ;;  %v404_v23 = vmul.f32 0.0078125, %v374_v21 }
  0xfc   : > { %v3767_v24 = vsub.f32 %v351_v0, %v402_v22  ;;  %v3769_v25 = vsub.f32 %v353_v1, %v404_v23  ;;  %v3268_v0 = vld [vmem:[#allocation5 + $0x34] ss:$12 sps:$4 sm:$0xff]  }
  0xfd   : > { %v372_v26 = vpop.xlane.xlu0 %371  ;;  %v376_v27 = vpop.xlane.xlu1 %375  ;;  %v3270_v1 = vld [vmem:[#allocation5 + $0x20] ss:$12 sps:$4 sm:$0xff]   ;;  %779 = vmatprep.subr.bf16.mxu0 %v3268_v0  ;;  %v3275_v22 = vld [vmem:[#allocation5 + $0x48] ss:$12 sps:$4 sm:$0xff]  }
  0xfe   : > { %v403_v28 = vmul.f32 0.0078125, %v372_v26  ;;  %v434_v29 = vmul.f32 %v3767_v24, %v3767_v24  ;;  %v405_v30 = vmul.f32 0.0078125, %v376_v27  ;;  %v436_v31 = vmul.f32 %v3769_v25, %v3769_v25  ;;  %3012 = vmatprep.subr.bf16.mxu1 %v3270_v1 }
  0xff   : > { %3013 = vmatpush3.bf16.msra.mxu1 %v3270_v1 }
 0x100   : > { %450 = vadd.xlane.f32.xlu0 %v434_v29  ;;  %v3775_v32 = vsub.f32 %v352_v2, %v403_v28  ;;  %v3777_v33 = vsub.f32 %v354_v3, %v405_v30  ;;  %3014 = vmatprep.subr.bf16.mxu1 %v3274_v19  ;;  %v3276_v29 = vld [vmem:[#allocation5 + $0x64] ss:$12 sps:$4 sm:$0xff]  }
 0x101   : > { %v378_v34 = vpop.xlane.xlu0 %377  ;;  %v380_v35 = vpop.xlane.xlu1 %379  ;;  %v3278_v30 = vld [vmem:[#allocation5 + $0x50] ss:$12 sps:$4 sm:$0xff]  }
 0x102   : > { %v406_v36 = vmul.f32 0.0078125, %v378_v34  ;;  %v435_v37 = vmul.f32 %v3775_v32, %v3775_v32  ;;  %v407_v38 = vmul.f32 0.0078125, %v380_v35  ;;  %v437_v39 = vmul.f32 %v3777_v33, %v3777_v33  ;;  %v3280_v35 = vld [vmem:[#allocation5 + $0x7c] ss:$12 sps:$4 sm:$0xff]  }
 0x103   : > { %3015 = vmatpush3.bf16.msra.mxu1 %v3274_v19 }
 0x104   : > { %454 = vadd.xlane.f32.xlu0 %v436_v31  ;;  %452 = vadd.xlane.f32.xlu1 %v435_v37  ;;  %v3783_v40 = vsub.f32 %v355_v4, %v406_v36  ;;  %v3785_v41 = vsub.f32 %v356_v5, %v407_v38  ;;  %v3279_v31 = vld [vmem:[#allocation5 + $0x60] ss:$12 sps:$4 sm:$0xff]   ;;  %v3282_v36 = vld [vmem:[#allocation5 + $0x68] ss:$12 sps:$4 sm:$0xff]   ;;  %v3283_v37 = vld [vmem:[#allocation5 + $0x78] ss:$12 sps:$4 sm:$0xff]  }
 0x105   : > { %v382_v42 = vpop.xlane.xlu0 %381  ;;  %v384_v43 = vpop.xlane.xlu1 %383  ;;  %3016 = vmatprep.subr.bf16.mxu1 %v3278_v30  ;;  %v3286_v38 = vld [vmem:[#allocation5 + $0x80] ss:$12 sps:$4 sm:$0xff]  }
 0x106   : > { %v408_v44 = vmul.f32 0.0078125, %v382_v42  ;;  %v438_v45 = vmul.f32 %v3783_v40, %v3783_v40  ;;  %v409_v46 = vmul.f32 0.0078125, %v384_v43  ;;  %v439_v48 = vmul.f32 %v3785_v41, %v3785_v41  ;;  %v3288_v42 = vld [vmem:[#allocation5 + $0xac] ss:$12 sps:$4 sm:$0xff]  }
 0x107   : > { %3017 = vmatpush3.bf16.msra.mxu1 %v3278_v30  ;;  %v3290_v43 = vld [vmem:[#allocation5 + $0x98] ss:$12 sps:$4 sm:$0xff]  }
 0x108   : > { %456 = vadd.xlane.f32.xlu1 %v437_v39  ;;  %458 = vadd.xlane.f32.xlu0 %v438_v45  ;;  %v3789_v47 = vsub.f32 %v358_v7, %v409_v46  ;;  %v3794_v49 = vsub.f32 %v3731_v6, %v408_v44  ;;  %v3271_v7 = vld [vmem:[#allocation5 + $0x30] ss:$12 sps:$4 sm:$0xff]   ;;  %v3291_v44 = vld [vmem:[#allocation5 + $0xa8] ss:$12 sps:$4 sm:$0xff]   ;;  %v3493_v46 = vmov 0  }
 0x109   : > { %v386_v50 = vpop.xlane.xlu0 %385  ;;  %v388_v51 = vpop.xlane.xlu1 %387  ;;  %780 = vmatpush1.bf16.msra.mxu0 %v3271_v7  ;;  %3018 = vmatprep.subr.bf16.mxu1 %v3282_v36  ;;  %v3287_v39 = vld [vmem:[#allocation5 + $0x90] ss:$12 sps:$4 sm:$0xff]  }
 0x10a   : > { %v410_v52 = vmul.f32 0.0078125, %v386_v50  ;;  %v440_v53 = vmul.f32 %v3794_v49, %v3794_v49  ;;  %v411_v54 = vmul.f32 0.0078125, %v388_v51  ;;  %v441_v56 = vmul.f32 %v3789_v47, %v3789_v47  ;;  %781 = vmatprep.subr.bf16.mxu0 %v3272_v18  ;;  %v3292_v45 = vld [vmem:[#allocation5 + $0xb0] ss:$12 sps:$4 sm:$0xff]   ;;  %807 = vmatprep.mubr.bf16.mxu0 %v3493_v46 }
 0x10b   : > { %3019 = vmatpush3.bf16.msra.mxu1 %v3282_v36 }
 0x10c   : > { %460 = vadd.xlane.f32.xlu1 %v439_v48  ;;  %462 = vadd.xlane.f32.xlu0 %v440_v53  ;;  %v3799_v55 = vsub.f32 %v3738_v9, %v411_v54  ;;  %v3804_v57 = vsub.f32 %v3735_v8, %v410_v52 }
 0x10d   : > { %v390_v59 = vpop.xlane.xlu0 %389  ;;  %v392_v60 = vpop.xlane.xlu1 %391  ;;  %782 = vmatpush1.bf16.msra.mxu0 %v3275_v22  ;;  %3020 = vmatprep.subr.bf16.mxu1 %v3286_v38  ;;  %v3845_v22 = vld [vmem:[%s4929_s1] ss:$0 sm:$0xff] }
 0x10e   : > { %v412_v61 = vmul.f32 0.0078125, %v390_v59  ;;  %v442_v62 = vmul.f32 %v3804_v57, %v3804_v57  ;;  %v413_v63 = vmul.f32 0.0078125, %v392_v60  ;;  %v443_v3 = vmul.f32 %v3799_v55, %v3799_v55  ;;  %783 = vmatprep.subr.bf16.mxu0 %v3276_v29 }
 0x10f   : > { %3021 = vmatpush3.bf16.msra.mxu1 %v3286_v38 }
 0x110   : > { %464 = vadd.xlane.f32.xlu1 %v441_v56  ;;  %466 = vadd.xlane.f32.xlu0 %v442_v62  ;;  %v3809_v2 = vsub.f32 %v3747_v11, %v413_v63  ;;  %v3814_v4 = vsub.f32 %v3744_v10, %v412_v61 }
 0x111   : > { %v394_v5 = vpop.xlane.xlu0 %393  ;;  %v396_v6 = vpop.xlane.xlu1 %395  ;;  %784 = vmatpush1.bf16.msra.mxu0 %v3279_v31  ;;  %3022 = vmatprep.subr.bf16.mxu1 %v3290_v43 }
 0x112   : > { %v414_v8 = vmul.f32 0.0078125, %v394_v5  ;;  %v444_v9 = vmul.f32 %v3814_v4, %v3814_v4  ;;  %v415_v16 = vmul.f32 0.0078125, %v396_v6  ;;  %v445_v11 = vmul.f32 %v3809_v2, %v3809_v2  ;;  %785 = vmatprep.subr.bf16.mxu0 %v3280_v35  ;;  %v3852_v35 = vld [vmem:[%s4930_s2] ss:$0 sm:$0xff] }
 0x113   : > { %3023 = vmatpush3.bf16.msra.mxu1 %v3290_v43 }
 0x114   : > { %468 = vadd.xlane.f32.xlu1 %v443_v3  ;;  %470 = vadd.xlane.f32.xlu0 %v444_v9  ;;  %v3821_v10 = vsub.f32 %v3752_v12, %v414_v8  ;;  %v3824_v17 = vsub.f32 %v3755_v13, %v415_v16 }
 0x115   : > { %v398_v20 = vpop.xlane.xlu0 %397  ;;  %v400_v21 = vpop.xlane.xlu1 %399  ;;  %786 = vmatpush1.bf16.msra.mxu0 %v3283_v37  ;;  %3024 = vmatprep.subr.bf16.mxu1 %v3292_v45 }
 0x116   : > { %v416_v23 = vmul.f32 0.0078125, %v398_v20  ;;  %v446_v26 = vmul.f32 %v3821_v10, %v3821_v10  ;;  %v417_v27 = vmul.f32 0.0078125, %v400_v21  ;;  %v447_v13 = vmul.f32 %v3824_v17, %v3824_v17 }
 0x117   : > { %3025 = vmatpush3.bf16.msra.mxu1 %v3292_v45 }
 0x118   : > { %472 = vadd.xlane.f32.xlu1 %v445_v11  ;;  %474 = vadd.xlane.f32.xlu0 %v446_v26  ;;  %v3829_v12 = vsub.f32 %v3763_v15, %v417_v27  ;;  %v3834_v28 = vsub.f32 %v3760_v14, %v416_v23  ;;  %v3284_v14 = vld [vmem:[#allocation5 + $0x94] ss:$12 sps:$4 sm:$0xff]  }
 0x119   : > { %787 = vmatprep.subr.bf16.mxu0 %v3284_v14 }
 0x11a   : > { %v448_v34 = vmul.f32 %v3834_v28, %v3834_v28  ;;  %v449_v15 = vmul.f32 %v3829_v12, %v3829_v12  ;;  %788 = vmatpush1.bf16.msra.mxu0 %v3287_v39 }
 0x11b   : > { %789 = vmatprep.subr.bf16.mxu0 %v3288_v42 }
 0x11c   : > { %476 = vadd.xlane.f32.xlu1 %v447_v13  ;;  %478 = vadd.xlane.f32.xlu0 %v448_v34 }
 0x11e   : > { %790 = vmatpush1.bf16.msra.mxu0 %v3291_v44 }
 0x120   : > { %480 = vadd.xlane.f32.xlu1 %v449_v15 }
 0x18d   : > { %v451_v48 = vpop.xlane.xlu0 %450 }
 0x18e   : > { %v482_v50 = vmul.f32 0.0078125, %v451_v48 }
 0x190   : > { %v498_v51 = vadd.f32 1e-05, %v482_v50 }
 0x191   : > { %v453_v52 = vpop.xlane.xlu1 %452  ;;  %v455_v53 = vpop.xlane.xlu0 %454 }
 0x192   : > { %3293 = vrsqrt.f32 %v498_v51  ;;  %v483_v54 = vmul.f32 0.0078125, %v453_v52  ;;  %v484_v56 = vmul.f32 0.0078125, %v455_v53 }
 0x194   : > { %v499_v58 = vadd.f32 1e-05, %v483_v54  ;;  %v500_v59 = vadd.f32 1e-05, %v484_v56 }
 0x195   : > { %v457_v60 = vpop.xlane.xlu1 %456  ;;  %v459_v61 = vpop.xlane.xlu0 %458 }
 0x196   : > { %3295 = vrsqrt.f32 %v499_v58  ;;  %v485_v62 = vmul.f32 0.0078125, %v457_v60  ;;  %v486_v63 = vmul.f32 0.0078125, %v459_v61 }
 0x197   : > { %3297 = vrsqrt.f32 %v500_v59 }
 0x198   : > { %v501_v0 = vadd.f32 1e-05, %v485_v62  ;;  %v502_v1 = vadd.f32 1e-05, %v486_v63 }
 0x199   : > { %v461_v3 = vpop.xlane.xlu1 %460  ;;  %v463_v5 = vpop.xlane.xlu0 %462 }
 0x19a   : > { %3299 = vrsqrt.f32 %v501_v0  ;;  %v487_v6 = vmul.f32 0.0078125, %v461_v3  ;;  %v488_v7 = vmul.f32 0.0078125, %v463_v5 }
 0x19b   : > { %3301 = vrsqrt.f32 %v502_v1 }
 0x19c   : > { %v3294_v8 = vpop.eup %3293  ;;  %v503_v9 = vadd.f32 1e-05, %v487_v6  ;;  %v504_v16 = vadd.f32 1e-05, %v488_v7 }
 0x19d   : > { %v465_v11 = vpop.xlane.xlu1 %464  ;;  %v467_v18 = vpop.xlane.xlu0 %466  ;;  %v530_v19 = vmul.f32 %v3294_v8, %v3767_v24 }
 0x19e   : > { %3303 = vrsqrt.f32 %v503_v9  ;;  %v489_v20 = vmul.f32 0.0078125, %v465_v11  ;;  %v490_v21 = vmul.f32 0.0078125, %v467_v18 }
 0x19f   : > { %3305 = vrsqrt.f32 %v504_v16  ;;  %v552_v34 = vmul.f32 %v3845_v22, %v530_v19 }
 0x1a0   : > { %v3296_v23 = vpop.eup %3295  ;;  %v505_v26 = vadd.f32 1e-05, %v489_v20  ;;  %v506_v27 = vadd.f32 1e-05, %v490_v21 }
 0x1a1   : > { %v3298_v13 = vpop.eup %3297  ;;  %v469_v29 = vpop.xlane.xlu1 %468  ;;  %v531_v31 = vmul.f32 %v3296_v23, %v3775_v32  ;;  %v574_v45 = vadd.f32 %v3852_v35, %v552_v34 }
 0x1a2   : > { %v471_v30 = vpop.xlane.xlu0 %470  ;;  %3307 = vrsqrt.f32 %v505_v26  ;;  %v491_v24 = vmul.f32 0.0078125, %v469_v29  ;;  %v532_v36 = vmul.f32 %v3298_v13, %v3769_v25 }
 0x1a3   : > { %v492_v15 = vmul.f32 0.0078125, %v471_v30  ;;  %3309 = vrsqrt.f32 %v506_v27  ;;  %v553_v37 = vmul.f32 %v3845_v22, %v531_v31 }
 0x1a4   : > { %v3300_v14 = vpop.eup %3299  ;;  %v507_v38 = vadd.f32 1e-05, %v491_v24  ;;  %v554_v32 = vmul.f32 %v3845_v22, %v532_v36 }
 0x1a5   : > { %v508_v39 = vadd.f32 1e-05, %v492_v15  ;;  %v3302_v42 = vpop.eup %3301  ;;  %v473_v43 = vpop.xlane.xlu1 %472  ;;  %v575_v48 = vadd.f32 %v3852_v35, %v553_v37  ;;  %v533_v50 = vmul.f32 %v3300_v14, %v3777_v33 }
 0x1a6   : > { %v475_v44 = vpop.xlane.xlu0 %474  ;;  %3311 = vrsqrt.f32 %v507_v38  ;;  %v493_v51 = vmul.f32 0.0078125, %v473_v43  ;;  %v534_v54 = vmul.f32 %v3302_v42, %v3783_v40  ;;  %v576_v60 = vadd.f32 %v3852_v35, %v554_v32 }
 0x1a7   : > { %v494_v25 = vmul.f32 0.0078125, %v475_v44  ;;  %3313 = vrsqrt.f32 %v508_v39  ;;  %v590_v52 = vpack.c.bf16 %v575_v48, %v574_v45  ;;  %v555_v53 = vmul.f32 %v3845_v22, %v533_v50 }
 0x1a8   : > { %v3304_v56 = vpop.eup %3303  ;;  %v509_v58 = vadd.f32 1e-05, %v493_v51  ;;  %v556_v1 = vmul.f32 %v3845_v22, %v534_v54 }
 0x1a9   : > { %v510_v59 = vadd.f32 1e-05, %v494_v25  ;;  %v3306_v61 = vpop.eup %3305  ;;  %v477_v62 = vpop.xlane.xlu1 %476  ;;  %808 = vmatmul.mubr.bf16.vlgmr.msra.gmra.mrb[0].mxu0 %v590_v52  ;;  %3026 = vmatprep.mubr.bf16.mxu1 %v590_v52  ;;  %v577_v33 = vadd.f32 %v3852_v35, %v555_v53  ;;  %v535_v0 = vmul.f32 %v3304_v56, %v3785_v41 }
 0x1aa   : > { %v479_v63 = vpop.xlane.xlu0 %478  ;;  %3315 = vrsqrt.f32 %v509_v58  ;;  %v495_v3 = vmul.f32 0.0078125, %v477_v62  ;;  %817 = vmatprep.mubr.bf16.mxu0 %v3493_v46  ;;  %v536_v40 = vmul.f32 %v3306_v61, %v3794_v49  ;;  %v578_v19 = vadd.f32 %v3852_v35, %v556_v1 }
 0x1ab   : > { %v496_v5 = vmul.f32 0.0078125, %v479_v63  ;;  %3317 = vrsqrt.f32 %v510_v59  ;;  %v591_v6 = vpack.c.bf16 %v577_v33, %v576_v60  ;;  %v557_v7 = vmul.f32 %v3845_v22, %v535_v0 }
 0x1ac   : > { %v3308_v8 = vpop.eup %3307  ;;  %v511_v9 = vadd.f32 1e-05, %v495_v3  ;;  %v558_v11 = vmul.f32 %v3845_v22, %v536_v40 }
 0x1ad   : > { %v512_v16 = vadd.f32 1e-05, %v496_v5  ;;  %v3310_v18 = vpop.eup %3309  ;;  %v481_v41 = vpop.xlane.xlu1 %480  ;;  %3027 = vmatmul.mubr.bf16.vlgmr.msra.gmra.mrb[0].mxu1 %v591_v6  ;;  %v579_v20 = vadd.f32 %v3852_v35, %v557_v7  ;;  %v537_v21 = vmul.f32 %v3308_v8, %v3789_v47 }
 0x1ae   : > { %3319 = vrsqrt.f32 %v511_v9  ;;  %v497_v49 = vmul.f32 0.0078125, %v481_v41  ;;  %v538_v23 = vmul.f32 %v3310_v18, %v3804_v57  ;;  %v580_v30 = vadd.f32 %v3852_v35, %v558_v11 }
 0x1af   : > { %3321 = vrsqrt.f32 %v512_v16  ;;  %v592_v26 = vpack.c.bf16 %v579_v20, %v578_v19  ;;  %v559_v27 = vmul.f32 %v3845_v22, %v537_v21 }
 0x1b0   : > { %v3312_v13 = vpop.eup %3311  ;;  %v513_v29 = vadd.f32 1e-05, %v497_v49  ;;  %v560_v47 = vmul.f32 %v3845_v22, %v538_v23 }
 0x1b1   : > { %v3314_v31 = vpop.eup %3313  ;;  %818 = vmatmul.mubr.bf16.gmra.mrb[4].mxu0 %v591_v6  ;;  %3030 = vmatprep.mubr.bf16.mxu1 %v592_v26  ;;  %v581_v34 = vadd.f32 %v3852_v35, %v559_v27  ;;  %v539_v24 = vmul.f32 %v3312_v13, %v3799_v55 }
 0x1b2   : > { %3323 = vrsqrt.f32 %v513_v29  ;;  %827 = vmatprep.mubr.bf16.mxu0 %v3493_v46  ;;  %v540_v57 = vmul.f32 %v3314_v31, %v3814_v4  ;;  %v582_v39 = vadd.f32 %v3852_v35, %v560_v47 }
 0x1b3   : > { %v593_v15 = vpack.c.bf16 %v581_v34, %v580_v30  ;;  %v561_v36 = vmul.f32 %v3845_v22, %v539_v24 }
 0x1b4   : > { %v3316_v37 = vpop.eup %3315  ;;  %v562_v14 = vmul.f32 %v3845_v22, %v540_v57 }
 0x1b5   : > { %v3318_v38 = vpop.eup %3317  ;;  %3031 = vmatmul.mubr.bf16.gmra.mrb[4].mxu1 %v593_v15  ;;  %v583_v32 = vadd.f32 %v3852_v35, %v561_v36  ;;  %v541_v55 = vmul.f32 %v3316_v37, %v3809_v2 }
 0x1b6   : > { %v542_v42 = vmul.f32 %v3318_v38, %v3821_v10  ;;  %v584_v45 = vadd.f32 %v3852_v35, %v562_v14 }
 0x1b7   : > { %v594_v43 = vpack.c.bf16 %v583_v32, %v582_v39  ;;  %v563_v44 = vmul.f32 %v3845_v22, %v541_v55 }
 0x1b8   : > { %v3320_v4 = vpop.eup %3319  ;;  %v564_v25 = vmul.f32 %v3845_v22, %v542_v42 }
 0x1b9   : > { %v3322_v48 = vpop.eup %3321  ;;  %828 = vmatmul.mubr.bf16.gmra.mrb[8].mxu0 %v592_v26  ;;  %3034 = vmatprep.mubr.bf16.mxu1 %v594_v43  ;;  %v585_v50 = vadd.f32 %v3852_v35, %v563_v44  ;;  %v543_v51 = vmul.f32 %v3320_v4, %v3824_v17 }
 0x1ba   : > { %837 = vmatprep.mubr.bf16.mxu0 %v3493_v46  ;;  %v544_v2 = vmul.f32 %v3322_v48, %v3834_v28  ;;  %v586_v54 = vadd.f32 %v3852_v35, %v564_v25 }
 0x1bb   : > { %v595_v10 = vpack.c.bf16 %v585_v50, %v584_v45  ;;  %v565_v52 = vmul.f32 %v3845_v22, %v543_v51 }
 0x1bc   : > { %v3324_v53 = vpop.eup %3323  ;;  %v566_v59 = vmul.f32 %v3845_v22, %v544_v2 }
 0x1bd   : > { %3035 = vmatmul.mubr.bf16.gmra.mrb[8].mxu1 %v595_v10  ;;  %v587_v56 = vadd.f32 %v3852_v35, %v565_v52  ;;  %v545_v58 = vmul.f32 %v3324_v53, %v3829_v12  ;;  %v632_v12 = vlaneseq }
 0x1be   : > { %v588_v28 = vadd.f32 %v3852_v35, %v566_v59 }
 0x1bf   : > { %v596_v17 = vpack.c.bf16 %v587_v56, %v586_v54  ;;  %v567_v60 = vmul.f32 %v3845_v22, %v545_v58  ;;  %v633_v22 = vshrl.u32 %v632_v12, 7 }
 0x1c1   : > { %838 = vmatmul.mubr.bf16.gmra.mrb[12].mxu0 %v593_v15  ;;  %3038 = vmatprep.mubr.bf16.mxu1 %v596_v17  ;;  %v589_v61 = vadd.f32 %v3852_v35, %v567_v60  ;;  %v634_v63 = vsub.s32 0, %v633_v22  ;;  %v630_v35 = vld [vmem:[%s4932_s4] sm:$0x7]  ;;  %v642_v0 = vsub.s32 2, %v633_v22  ;;  %v638_v5 = vsub.s32 1, %v633_v22 }
 0x1c2   : > { %847 = vmatprep.mubr.bf16.mxu0 %v3493_v46 }
 0x1c3   : > { %v597_v62 = vpack.c.bf16 %v589_v61, %v588_v28  ;;  %v3909_v33 = vrot.slane %v630_v35, %v634_v63  ;;  %v3913_v6 = vrot.slane %v630_v35, %v642_v0  ;;  %v3922_v11 = vrot.slane %v630_v35, %v638_v5 }
 0x1c5   : > { %3039 = vmatmul.mubr.bf16.gmra.mrb[12].mxu1 %v597_v62 }
 0x1c9   : > { %848 = vmatmul.mubr.bf16.gmra.mrb[16].mxu0 %v594_v43 }
 0x1ca   : > { %857 = vmatprep.mubr.bf16.mxu0 %v3493_v46 }
 0x1d1   : > { %858 = vmatmul.mubr.bf16.gmra.mrb[20].mxu0 %v595_v10 }
 0x1d2   : > { %867 = vmatprep.mubr.bf16.mxu0 %v3493_v46 }
 0x1d9   : > { %868 = vmatmul.mubr.bf16.gmra.mrb[24].mxu0 %v596_v17 }
 0x1da   : > { %877 = vmatprep.mubr.bf16.mxu0 %v3493_v46 }
 0x1e1   : > { %878 = vmatmul.mubr.bf16.gmra.mrb[28].mxu0 %v597_v62 }
 0x27c   : > { %v809_v1 = vpop.f32.mrb[0].mxu0 }
 0x27d   : > { %v810_v3 = vadd.f32 %v809_v1, %v3909_v33  ;;  %v811_v40 = vpop.f32.mrb[1].mxu0 }
 0x27e   : > { %v813_v46 = vpop.f32.mrb[2].mxu0  ;;  %v3941_v31 = vadd.f32 %v811_v40, %v3922_v11 }
 0x27f   : > { %v2899_v7 = vpack.c.bf16 %v810_v3, %v810_v3  ;;  %v814_v8 = vadd.f32 %v813_v46, %v3909_v33  ;;  %v815_v9 = vpop.f32.mrb[3].mxu0 }
 0x280   : > { %v3028_v16 = vpop.f32.mrb[0].mxu1  ;;  %v3934_v49 = vadd.f32 %v815_v9, %v3922_v11 }
 0x281   : > { %1050 = vst.msk [vmem:[%s3918_s6] sm:$0xf] %vm1049_vm0, %v2899_v7  ;;  %v3924_v18 = vpack.c.bf16 %v814_v8, %v814_v8  ;;  %v931_v41 = vadd.f32 %v3028_v16, %v3913_v6  ;;  %1676 = vrot.lane.b32.xlu0 %v2899_v7, %s3494_s10  ;;  %1198 = vrot.lane.b32.xlu1 %v2899_v7, %s3495_s17  ;;  %v922_v19 = vpop.f32.mrb[1].mxu1 }
 0x282   : > { %v923_v20 = vadd.f32 %v922_v19, %v3913_v6  ;;  %v3029_v21 = vpop.f32.mrb[2].mxu1  ;;  %v3141_v38 = vpack.i.bf16 %v3934_v49, %v3941_v31 }
 0x283   : > { %1051 = vst.msk [vmem:[%s3918_s6 + $0x4] sm:$0xf] %vm1049_vm0, %v3924_v18  ;;  %v2921_v23 = vpack.c.bf16 %v931_v41, %v931_v41  ;;  %v934_v26 = vadd.f32 %v3029_v21, %v3913_v6  ;;  %v925_v27 = vpop.f32.mrb[3].mxu1 }
 0x284   : > { %v3937_v13 = vpack.c.bf16 %v923_v20, %v923_v20  ;;  %v926_v29 = vadd.f32 %v925_v27, %v3913_v6  ;;  %v819_v30 = vpop.f32.mrb[4].mxu0 }
 0x285   : > { %1184 = vst.msk [vmem:[%s3945_s19 + $0x8] sm:$0xf] %vm1049_vm0, %v2921_v23  ;;  %v3949_v34 = vpack.c.bf16 %v934_v26, %v934_v26  ;;  %v820_v24 = vadd.f32 %v819_v30, %v3909_v33  ;;  %1445 = vrot.lane.b32.xlu1 %v2899_v7, %s3496_s20  ;;  %1384 = vrot.lane.b32.xlu0 %v2921_v23, %s3495_s17  ;;  %v821_v47 = vpop.f32.mrb[5].mxu0 }
 0x286   : > { %1182 = vst.msk [vmem:[%s3945_s19] sm:$0xf] %vm1049_vm0, %v3937_v13  ;;  %v3957_v57 = vpack.c.bf16 %v926_v29, %v926_v29  ;;  %v823_v15 = vpop.f32.mrb[6].mxu0  ;;  %v4035_v40 = vadd.f32 %v821_v47, %v3922_v11 }
 0x287   : > { %1185 = vst.msk [vmem:[%s3945_s19 + $0xc] sm:$0xf] %vm1049_vm0, %v3949_v34  ;;  %v3962_v36 = vpack.c.bf16 %v820_v24, %v820_v24  ;;  %v824_v37 = vadd.f32 %v823_v15, %v3909_v33  ;;  %v825_v14 = vpop.f32.mrb[7].mxu0 }
 0x288   : > { %1183 = vst.msk [vmem:[%s3945_s19 + $0x4] sm:$0xf] %vm1049_vm0, %v3957_v57  ;;  %v3032_v39 = vpop.f32.mrb[4].mxu1  ;;  %v4023_v22 = vadd.f32 %v825_v14, %v3922_v11 }
 0x289   : > { %1052 = vst.msk [vmem:[%s3918_s6 + $0x8] sm:$0xf] %vm1049_vm0, %v3962_v36  ;;  %v3973_v32 = vpack.c.bf16 %v824_v37, %v824_v37  ;;  %v947_v55 = vadd.f32 %v3032_v39, %v3913_v6  ;;  %3142 = vrot.lane.b32.xlu1 %v3141_v38, %s3495_s17  ;;  %1615 = vrot.lane.b32.xlu0 %v2921_v23, %s3496_s20  ;;  %v938_v42 = vpop.f32.mrb[5].mxu1 }
 0x28a   : > { %v939_v43 = vadd.f32 %v938_v42, %v3913_v6  ;;  %v3033_v44 = vpop.f32.mrb[6].mxu1  ;;  %v4064_v21 = vpack.i.bf16 %v4023_v22, %v4035_v40 }
 0x28b   : > { %1053 = vst.msk [vmem:[%s3918_s6 + $0xc] sm:$0xf] %vm1049_vm0, %v3973_v32  ;;  %v3982_v4 = vpack.c.bf16 %v947_v55, %v947_v55  ;;  %v950_v45 = vadd.f32 %v3033_v44, %v3913_v6  ;;  %v941_v48 = vpop.f32.mrb[7].mxu1 }
 0x28c   : > { %v3985_v50 = vpack.c.bf16 %v939_v43, %v939_v43  ;;  %v942_v51 = vadd.f32 %v941_v48, %v3913_v6  ;;  %v829_v25 = vpop.f32.mrb[8].mxu0 }
 0x28d   : > { %1188 = vst.msk [vmem:[%s3945_s19 + $0x18] sm:$0xf] %vm1049_vm0, %v3982_v4  ;;  %v3991_v2 = vpack.c.bf16 %v950_v45, %v950_v45  ;;  %v830_v10 = vadd.f32 %v829_v25, %v3909_v33  ;;  %3147 = vrot.lane.b32.xlu1 %v3141_v38, %s3496_s20  ;;  %3152 = vrot.lane.b32.xlu0 %v3141_v38, %s3494_s10  ;;  %v3996_v52 = vpop.f32.mrb[9].mxu0 }
 0x28e   : > { %1186 = vst.msk [vmem:[%s3945_s19 + $0x10] sm:$0xf] %vm1049_vm0, %v3985_v50  ;;  %v4001_v53 = vpack.c.bf16 %v942_v51, %v942_v51  ;;  %v833_v54 = vpop.f32.mrb[10].mxu0 }
 0x28f   : > { %1189 = vst.msk [vmem:[%s3945_s19 + $0x1c] sm:$0xf] %vm1049_vm0, %v3991_v2  ;;  %v4006_v56 = vpack.c.bf16 %v830_v10, %v830_v10  ;;  %v834_v58 = vadd.f32 %v833_v54, %v3909_v33  ;;  %v835_v59 = vpop.f32.mrb[11].mxu0 }
 0x290   : > { %1187 = vst.msk [vmem:[%s3945_s19 + $0x14] sm:$0xf] %vm1049_vm0, %v4001_v53  ;;  %v3036_v17 = vpop.f32.mrb[8].mxu1  ;;  %v4108_v48 = vadd.f32 %v835_v59, %v3922_v11 }
 0x291   : > { %1054 = vst.msk [vmem:[%s3918_s6 + $0x10] sm:$0xf] %vm1049_vm0, %v4006_v56  ;;  %v4015_v60 = vpack.c.bf16 %v834_v58, %v834_v58  ;;  %v963_v28 = vadd.f32 %v3036_v17, %v3913_v6  ;;  %1200 = vrot.lane.b32.xlu1 %v3924_v18, %s3495_s17  ;;  %1846 = vrot.lane.b32.xlu0 %v2921_v23, %s3494_s10  ;;  %v954_v61 = vpop.f32.mrb[9].mxu1 }
 0x292   : > { %v955_v62 = vadd.f32 %v954_v61, %v3913_v6  ;;  %v3037_v12 = vpop.f32.mrb[10].mxu1  ;;  %v4124_v58 = vadd.f32 %v3996_v52, %v3922_v11 }
 0x293   : > { %1055 = vst.msk [vmem:[%s3918_s6 + $0x14] sm:$0xf] %vm1049_vm0, %v4015_v60  ;;  %v4028_v63 = vpack.c.bf16 %v963_v28, %v963_v28  ;;  %v966_v35 = vadd.f32 %v3037_v12, %v3913_v6  ;;  %v957_v0 = vpop.f32.mrb[11].mxu1 }
 0x294   : > { %v4031_v1 = vpack.c.bf16 %v955_v62, %v955_v62  ;;  %v958_v3 = vadd.f32 %v957_v0, %v3913_v6  ;;  %v839_v5 = vpop.f32.mrb[12].mxu0  ;;  %v4140_v17 = vpack.i.bf16 %v4108_v48, %v4124_v58 }
 0x295   : > { %1192 = vst.msk [vmem:[%s3945_s19 + $0x28] sm:$0xf] %vm1049_vm0, %v4028_v63  ;;  %v4040_v46 = vpack.c.bf16 %v966_v35, %v966_v35  ;;  %v840_v7 = vadd.f32 %v839_v5, %v3909_v33  ;;  %1380 = vrot.lane.b32.xlu0 %v3937_v13, %s3495_s17  ;;  %1202 = vrot.lane.b32.xlu1 %v3962_v36, %s3495_s17  ;;  %v4047_v8 = vpop.f32.mrb[13].mxu0 }
 0x296   : > { %1190 = vst.msk [vmem:[%s3945_s19 + $0x20] sm:$0xf] %vm1049_vm0, %v4031_v1  ;;  %v4052_v9 = vpack.c.bf16 %v958_v3, %v958_v3  ;;  %v843_v16 = vpop.f32.mrb[14].mxu0 }
 0x297   : > { %1193 = vst.msk [vmem:[%s3945_s19 + $0x2c] sm:$0xf] %vm1049_vm0, %v4040_v46  ;;  %v4057_v41 = vpack.c.bf16 %v840_v7, %v840_v7  ;;  %v844_v19 = vadd.f32 %v843_v16, %v3909_v33  ;;  %v4060_v20 = vpop.f32.mrb[15].mxu0 }
 0x298   : > { %1191 = vst.msk [vmem:[%s3945_s19 + $0x24] sm:$0xf] %vm1049_vm0, %v4052_v9  ;;  %v3040_v23 = vpop.f32.mrb[12].mxu1 }
 0x299   : > { %1056 = vst.msk [vmem:[%s3918_s6 + $0x18] sm:$0xf] %vm1049_vm0, %v4057_v41  ;;  %v4072_v26 = vpack.c.bf16 %v844_v19, %v844_v19  ;;  %v979_v27 = vadd.f32 %v3040_v23, %v3913_v6  ;;  %1447 = vrot.lane.b32.xlu0 %v3924_v18, %s3496_s20  ;;  %3157 = vrot.lane.b32.xlu1 %v4064_v21, %s3495_s17  ;;  %v970_v29 = vpop.f32.mrb[13].mxu1 }
 0x29a   : > { %v971_v30 = vadd.f32 %v970_v29, %v3913_v6  ;;  %v3041_v24 = vpop.f32.mrb[14].mxu1 }
 0x29b   : > { %1057 = vst.msk [vmem:[%s3918_s6 + $0x1c] sm:$0xf] %vm1049_vm0, %v4072_v26  ;;  %v4083_v47 = vpack.c.bf16 %v979_v27, %v979_v27  ;;  %v982_v15 = vadd.f32 %v3041_v24, %v3913_v6  ;;  %v973_v37 = vpop.f32.mrb[15].mxu1  ;;  %v4178_v27 = vadd.f32 %v4060_v20, %v3922_v11 }
 0x29c   : > { %v4086_v14 = vpack.c.bf16 %v971_v30, %v971_v30  ;;  %v974_v38 = vadd.f32 %v973_v37, %v3913_v6  ;;  %v849_v39 = vpop.f32.mrb[16].mxu0  ;;  %v4188_v37 = vadd.f32 %v4047_v8, %v3922_v11 }
 0x29d   : > { %1196 = vst.msk [vmem:[%s3945_s19 + $0x38] sm:$0xf] %vm1049_vm0, %v4083_v47  ;;  %v4092_v55 = vpack.c.bf16 %v982_v15, %v982_v15  ;;  %v850_v42 = vadd.f32 %v849_v39, %v3909_v33  ;;  %1611 = vrot.lane.b32.xlu0 %v3937_v13, %s3496_s20  ;;  %1204 = vrot.lane.b32.xlu1 %v3973_v32, %s3495_s17  ;;  %v851_v43 = vpop.f32.mrb[17].mxu0 }
 0x29e   : > { %1194 = vst.msk [vmem:[%s3945_s19 + $0x30] sm:$0xf] %vm1049_vm0, %v4086_v14  ;;  %v4102_v6 = vpack.c.bf16 %v974_v38, %v974_v38  ;;  %v4105_v44 = vadd.f32 %v851_v43, %v3922_v11  ;;  %v853_v45 = vpop.f32.mrb[18].mxu0  ;;  %v4204_v20 = vpack.i.bf16 %v4178_v27, %v4188_v37 }
 0x29f   : > { %1197 = vst.msk [vmem:[%s3945_s19 + $0x3c] sm:$0xf] %vm1049_vm0, %v4092_v55  ;;  %v4113_v51 = vpack.c.bf16 %v850_v42, %v850_v42  ;;  %v854_v25 = vadd.f32 %v853_v45, %v3909_v33  ;;  %v855_v10 = vpop.f32.mrb[19].mxu0 }
 0x2a0   : > { %1195 = vst.msk [vmem:[%s3945_s19 + $0x34] sm:$0xf] %vm1049_vm0, %v4102_v6  ;;  %v4120_v54 = vadd.f32 %v855_v10, %v3922_v11 }
 0x2a1   : > { %1058 = vst.msk [vmem:[%s3918_s6 + $0x20] sm:$0xf] %vm1049_vm0, %v4113_v51  ;;  %v4129_v59 = vpack.c.bf16 %v854_v25, %v854_v25  ;;  %1678 = vrot.lane.b32.xlu0 %v3924_v18, %s3494_s10  ;;  %1206 = vrot.lane.b32.xlu1 %v4006_v56, %s3495_s17 }
 0x2a3   : > { %1059 = vst.msk [vmem:[%s3918_s6 + $0x24] sm:$0xf] %vm1049_vm0, %v4129_v59 }
 0x2a4   : > { %v859_v52 = vpop.f32.mrb[20].mxu0 }
 0x2a5   : > { %v860_v28 = vadd.f32 %v859_v52, %v3909_v33  ;;  %1842 = vrot.lane.b32.xlu0 %v3937_v13, %s3494_s10  ;;  %3172 = vrot.lane.b32.xlu1 %v4140_v17, %s3495_s17  ;;  %v861_v18 = vpop.f32.mrb[21].mxu0 }
 0x2a6   : > { %v4148_v61 = vadd.f32 %v861_v18, %v3922_v11  ;;  %v863_v62 = vpop.f32.mrb[22].mxu0 }
 0x2a7   : > { %v4150_v12 = vpack.c.bf16 %v860_v28, %v860_v28  ;;  %v864_v35 = vadd.f32 %v863_v62, %v3909_v33  ;;  %v865_v0 = vpop.f32.mrb[23].mxu0 }
 0x2a8   : > { %v4154_v3 = vadd.f32 %v865_v0, %v3922_v11 }
 0x2a9   : > { %1060 = vst.msk [vmem:[%s3918_s6 + $0x28] sm:$0xf] %vm1049_vm0, %v4150_v12  ;;  %v4159_v13 = vpack.c.bf16 %v864_v35, %v864_v35  ;;  %1386 = vrot.lane.b32.xlu0 %v3949_v34, %s3495_s17  ;;  %3177 = vrot.lane.b32.xlu1 %v4140_v17, %s3496_s20 }
 0x2ab   : > { %1061 = vst.msk [vmem:[%s3918_s6 + $0x2c] sm:$0xf] %vm1049_vm0, %v4159_v13 }
 0x2ac   : > { %v869_v5 = vpop.f32.mrb[24].mxu0 }
 0x2ad   : > { %v870_v7 = vadd.f32 %v869_v5, %v3909_v33  ;;  %1617 = vrot.lane.b32.xlu0 %v3949_v34, %s3496_s20  ;;  %1208 = vrot.lane.b32.xlu1 %v4015_v60, %s3495_s17  ;;  %v871_v16 = vpop.f32.mrb[25].mxu0 }
 0x2ae   : > { %v4174_v19 = vadd.f32 %v871_v16, %v3922_v11  ;;  %v873_v23 = vpop.f32.mrb[26].mxu0 }
 0x2af   : > { %v4180_v29 = vpack.c.bf16 %v870_v7, %v870_v7  ;;  %v874_v30 = vadd.f32 %v873_v23, %v3909_v33  ;;  %v875_v24 = vpop.f32.mrb[27].mxu0 }
 0x2b0   : > { %v4184_v15 = vadd.f32 %v875_v24, %v3922_v11 }
 0x2b1   : > { %1062 = vst.msk [vmem:[%s3918_s6 + $0x30] sm:$0xf] %vm1049_vm0, %v4180_v29  ;;  %v4193_v38 = vpack.c.bf16 %v874_v30, %v874_v30  ;;  %1848 = vrot.lane.b32.xlu0 %v3949_v34, %s3494_s10  ;;  %1210 = vrot.lane.b32.xlu1 %v4057_v41, %s3495_s17 }
 0x2b3   : > { %1063 = vst.msk [vmem:[%s3918_s6 + $0x34] sm:$0xf] %vm1049_vm0, %v4193_v38 }
 0x2b4   : > { %v879_v8 = vpop.f32.mrb[28].mxu0 }
 0x2b5   : > { %v880_v39 = vadd.f32 %v879_v8, %v3909_v33  ;;  %1382 = vrot.lane.b32.xlu0 %v3957_v57, %s3495_s17  ;;  %3187 = vrot.lane.b32.xlu1 %v4204_v20, %s3495_s17  ;;  %v881_v34 = vpop.f32.mrb[29].mxu0 }
 0x2b6   : > { %v4212_v42 = vadd.f32 %v881_v34, %v3922_v11  ;;  %v883_v43 = vpop.f32.mrb[30].mxu0 }
 0x2b7   : > { %v4214_v45 = vpack.c.bf16 %v880_v39, %v880_v39  ;;  %v884_v25 = vadd.f32 %v883_v43, %v3909_v33  ;;  %v885_v10 = vpop.f32.mrb[31].mxu0  ;;  %v4246_v33 = vpack.i.bf16 %v4120_v54, %v4105_v44 }
 0x2b8   : > { %v4218_v52 = vadd.f32 %v885_v10, %v3922_v11  ;;  %v4274_v11 = vpack.i.bf16 %v4154_v3, %v4148_v61 }
 0x2b9   : > { %1064 = vst.msk [vmem:[%s3918_s6 + $0x38] sm:$0xf] %vm1049_vm0, %v4214_v45  ;;  %v4223_v28 = vpack.c.bf16 %v884_v25, %v884_v25  ;;  %1613 = vrot.lane.b32.xlu0 %v3957_v57, %s3496_s20  ;;  %3197 = vrot.lane.b32.xlu1 %v4204_v20, %s3494_s10 }
 0x2ba   : > { %v4342_v16 = vpack.i.bf16 %v4218_v52, %v4212_v42 }
 0x2bb   : > { %1065 = vst.msk [vmem:[%s3918_s6 + $0x3c] sm:$0xf] %vm1049_vm0, %v4223_v28 }
 0x2bd   : > { %1844 = vrot.lane.b32.xlu0 %v3957_v57, %s3494_s10  ;;  %1212 = vrot.lane.b32.xlu1 %v4072_v26, %s3495_s17 }
 0x2c1   : > { %1449 = vrot.lane.b32.xlu0 %v3962_v36, %s3496_s20  ;;  %1214 = vrot.lane.b32.xlu1 %v4113_v51, %s3495_s17 }
 0x2c5   : > { %1680 = vrot.lane.b32.xlu0 %v3962_v36, %s3494_s10  ;;  %1461 = vrot.lane.b32.xlu1 %v4113_v51, %s3496_s20 }
 0x2c9   : > { %1392 = vrot.lane.b32.xlu0 %v3982_v4, %s3495_s17  ;;  %3202 = vrot.lane.b32.xlu1 %v4246_v33, %s3495_s17 }
 0x2cd   : > { %3162 = vrot.lane.b32.xlu0 %v4064_v21, %s3496_s20  ;;  %3207 = vrot.lane.b32.xlu1 %v4246_v33, %s3496_s20 }
 0x2d1   : > { %1623 = vrot.lane.b32.xlu0 %v3982_v4, %s3496_s20  ;;  %1216 = vrot.lane.b32.xlu1 %v4129_v59, %s3495_s17 }
 0x2d5   : > { %3167 = vrot.lane.b32.xlu0 %v4064_v21, %s3494_s10  ;;  %1694 = vrot.lane.b32.xlu1 %v4129_v59, %s3494_s10 }
 0x2d9   : > { %1854 = vrot.lane.b32.xlu0 %v3982_v4, %s3494_s10  ;;  %1218 = vrot.lane.b32.xlu1 %v4150_v12, %s3495_s17 }
 0x2dd   : > { %1388 = vrot.lane.b32.xlu0 %v3985_v50, %s3495_s17  ;;  %1465 = vrot.lane.b32.xlu1 %v4150_v12, %s3496_s20 }
 0x2e1   : > { %1451 = vrot.lane.b32.xlu0 %v3973_v32, %s3496_s20  ;;  %3217 = vrot.lane.b32.xlu1 %v4274_v11, %s3495_s17 }
 0x2e5   : > { %1619 = vrot.lane.b32.xlu0 %v3985_v50, %s3496_s20  ;;  %3227 = vrot.lane.b32.xlu1 %v4274_v11, %s3494_s10 }
 0x2e9   : > { %1682 = vrot.lane.b32.xlu0 %v3973_v32, %s3494_s10  ;;  %1220 = vrot.lane.b32.xlu1 %v4159_v13, %s3495_s17  ;;  %v4298_v32 = vpack.i.bf16 %v4184_v15, %v4174_v19 }
 0x2ed   : > { %1850 = vrot.lane.b32.xlu0 %v3985_v50, %s3494_s10  ;;  %1222 = vrot.lane.b32.xlu1 %v4180_v29, %s3495_s17 }
 0x2f1   : > { %1394 = vrot.lane.b32.xlu0 %v3991_v2, %s3495_s17  ;;  %1469 = vrot.lane.b32.xlu1 %v4180_v29, %s3496_s20 }
 0x2f3   : > { %v1199_v57 = vpop.permute.xlu1 %1198  ;;  %v1677_v36 = vpop.permute.xlu0 %1676 }
 0x2f4   : > { %2766 = vst.msk [vmem:[%s3918_s6 + $0x40] sm:$0xf] %vm1049_vm0, %v1199_v57  ;;  %2846 = vst.msk [vmem:[%s3918_s6 + $0xc0] sm:$0xf] %vm1049_vm0, %v1677_v36 }
 0x2f5   : > { %1625 = vrot.lane.b32.xlu0 %v3991_v2, %s3496_s20  ;;  %3232 = vrot.lane.b32.xlu1 %v4298_v32, %s3495_s17 }
 0x2f7   : > { %v1446_v4 = vpop.permute.xlu1 %1445  ;;  %v1385_v50 = vpop.permute.xlu0 %1384 }
 0x2f8   : > { %2806 = vst.msk [vmem:[%s3918_s6 + $0x80] sm:$0xf] %vm1049_vm0, %v1446_v4  ;;  %2792 = vst.msk [vmem:[%s3945_s19 + $0x48] sm:$0xf] %vm1049_vm0, %v1385_v50 }
 0x2f9   : > { %1856 = vrot.lane.b32.xlu0 %v3991_v2, %s3494_s10  ;;  %3237 = vrot.lane.b32.xlu1 %v4298_v32, %s3496_s20 }
 0x2fb   : > { %v4316_v21 = vpop.permute.xlu1 %3142  ;;  %v1616_v18 = vpop.permute.xlu0 %1615 }
 0x2fc   : > { %2832 = vst.msk [vmem:[%s3945_s19 + $0x88] sm:$0xf] %vm1049_vm0, %v1616_v18 }
 0x2fd   : > { %1390 = vrot.lane.b32.xlu0 %v4001_v53, %s3495_s17  ;;  %1224 = vrot.lane.b32.xlu1 %v4193_v38, %s3495_s17 }
 0x2ff   : > { %v4324_v62 = vpop.permute.xlu1 %3147  ;;  %v4326_v35 = vpop.permute.xlu0 %3152 }
 0x301   : > { %1621 = vrot.lane.b32.xlu0 %v4001_v53, %s3496_s20  ;;  %1226 = vrot.lane.b32.xlu1 %v4214_v45, %s3495_s17 }
 0x303   : > { %v1201_v2 = vpop.permute.xlu1 %1200  ;;  %v1847_v0 = vpop.permute.xlu0 %1846 }
 0x304   : > { %2767 = vst.msk [vmem:[%s3918_s6 + $0x44] sm:$0xf] %vm1049_vm0, %v1201_v2  ;;  %2872 = vst.msk [vmem:[%s3945_s19 + $0xc8] sm:$0xf] %vm1049_vm0, %v1847_v0 }
 0x305   : > { %1852 = vrot.lane.b32.xlu0 %v4001_v53, %s3494_s10  ;;  %1473 = vrot.lane.b32.xlu1 %v4214_v45, %s3496_s20 }
 0x307   : > { %v1203_v5 = vpop.permute.xlu1 %1202  ;;  %v1381_v7 = vpop.permute.xlu0 %1380 }
 0x308   : > { %2768 = vst.msk [vmem:[%s3918_s6 + $0x48] sm:$0xf] %vm1049_vm0, %v1203_v5  ;;  %2790 = vst.msk [vmem:[%s3945_s19 + $0x40] sm:$0xf] %vm1049_vm0, %v1381_v7 }
 0x309   : > { %1453 = vrot.lane.b32.xlu0 %v4006_v56, %s3496_s20  ;;  %3257 = vrot.lane.b32.xlu1 %v4342_v16, %s3494_s10 }
 0x30b   : > { %v4352_v53 = vpop.permute.xlu1 %3157  ;;  %v1448_v23 = vpop.permute.xlu0 %1447 }
 0x30c   : > { %2807 = vst.msk [vmem:[%s3918_s6 + $0x84] sm:$0xf] %vm1049_vm0, %v1448_v23  ;;  %v3144_v23 = vunpack.i.l.bf16 %v4316_v21 }
 0x30d   : > { %1684 = vrot.lane.b32.xlu0 %v4006_v56, %s3494_s10  ;;  %1228 = vrot.lane.b32.xlu1 %v4223_v28, %s3495_s17 }
 0x30f   : > { %v1205_v30 = vpop.permute.xlu1 %1204  ;;  %v1612_v24 = vpop.permute.xlu0 %1611 }
 0x310   : > { %2769 = vst.msk [vmem:[%s3918_s6 + $0x4c] sm:$0xf] %vm1049_vm0, %v1205_v30  ;;  %2830 = vst.msk [vmem:[%s3945_s19 + $0x80] sm:$0xf] %vm1049_vm0, %v1612_v24  ;;  %v3145_v24 = vunpack.i.h.bf16 %v4316_v21 }
 0x311   : > { %1400 = vrot.lane.b32.xlu0 %v4028_v63, %s3495_s17 }
 0x313   : > { %v1207_v8 = vpop.permute.xlu1 %1206  ;;  %v1679_v39 = vpop.permute.xlu0 %1678 }
 0x314   : > { %2770 = vst.msk [vmem:[%s3918_s6 + $0x50] sm:$0xf] %vm1049_vm0, %v1207_v8  ;;  %2847 = vst.msk [vmem:[%s3918_s6 + $0xc4] sm:$0xf] %vm1049_vm0, %v1679_v39  ;;  %v3159_v39 = vunpack.i.l.bf16 %v4352_v53 }
 0x315   : > { %1631 = vrot.lane.b32.xlu0 %v4028_v63, %s3496_s20 }
 0x317   : > { %v4372_v56 = vpop.permute.xlu1 %3172  ;;  %v1843_v34 = vpop.permute.xlu0 %1842 }
 0x318   : > { %2870 = vst.msk [vmem:[%s3945_s19 + $0xc0] sm:$0xf] %vm1049_vm0, %v1843_v34 }
 0x319   : > { %3182 = vrot.lane.b32.xlu0 %v4140_v17, %s3494_s10 }
 0x31b   : > { %v4378_v43 = vpop.permute.xlu1 %3177  ;;  %v1387_v25 = vpop.permute.xlu0 %1386 }
 0x31c   : > { %2793 = vst.msk [vmem:[%s3945_s19 + $0x4c] sm:$0xf] %vm1049_vm0, %v1387_v25  ;;  %v3160_v25 = vunpack.i.h.bf16 %v4352_v53 }
 0x31d   : > { %1862 = vrot.lane.b32.xlu0 %v4028_v63, %s3494_s10 }
 0x31f   : > { %v1209_v10 = vpop.permute.xlu1 %1208  ;;  %v1618_v57 = vpop.permute.xlu0 %1617 }
 0x320   : > { %2771 = vst.msk [vmem:[%s3918_s6 + $0x54] sm:$0xf] %vm1049_vm0, %v1209_v10  ;;  %2833 = vst.msk [vmem:[%s3945_s19 + $0x8c] sm:$0xf] %vm1049_vm0, %v1618_v57 }
 0x321   : > { %1396 = vrot.lane.b32.xlu0 %v4031_v1, %s3495_s17 }
 0x323   : > { %v1211_v17 = vpop.permute.xlu1 %1210  ;;  %v1849_v36 = vpop.permute.xlu0 %1848 }
 0x324   : > { %2772 = vst.msk [vmem:[%s3918_s6 + $0x58] sm:$0xf] %vm1049_vm0, %v1211_v17  ;;  %2873 = vst.msk [vmem:[%s3945_s19 + $0xcc] sm:$0xf] %vm1049_vm0, %v1849_v36  ;;  %v3174_v17 = vunpack.i.l.bf16 %v4372_v56  ;;  %v3175_v36 = vunpack.i.h.bf16 %v4372_v56 }
 0x325   : > { %1455 = vrot.lane.b32.xlu0 %v4015_v60, %s3496_s20 }
 0x327   : > { %v4396_v63 = vpop.permute.xlu1 %3187  ;;  %v1383_v4 = vpop.permute.xlu0 %1382 }
 0x328   : > { %2791 = vst.msk [vmem:[%s3945_s19 + $0x44] sm:$0xf] %vm1049_vm0, %v1383_v4 }
 0x329   : > { %1627 = vrot.lane.b32.xlu0 %v4031_v1, %s3496_s20 }
 0x32b   : > { %v4402_v50 = vpop.permute.xlu1 %3197  ;;  %v1614_v18 = vpop.permute.xlu0 %1613 }
 0x32c   : > { %2831 = vst.msk [vmem:[%s3945_s19 + $0x84] sm:$0xf] %vm1049_vm0, %v1614_v18 }
 0x32d   : > { %1686 = vrot.lane.b32.xlu0 %v4015_v60, %s3494_s10 }
 0x32f   : > { %v1213_v2 = vpop.permute.xlu1 %1212  ;;  %v1845_v0 = vpop.permute.xlu0 %1844 }
 0x330   : > { %2773 = vst.msk [vmem:[%s3918_s6 + $0x5c] sm:$0xf] %vm1049_vm0, %v1213_v2  ;;  %2871 = vst.msk [vmem:[%s3945_s19 + $0xc4] sm:$0xf] %vm1049_vm0, %v1845_v0  ;;  %v3189_v2 = vunpack.i.l.bf16 %v4396_v63 }
 0x331   : > { %1858 = vrot.lane.b32.xlu0 %v4031_v1, %s3494_s10 }
 0x333   : > { %v1215_v5 = vpop.permute.xlu1 %1214  ;;  %v1450_v7 = vpop.permute.xlu0 %1449 }
 0x334   : > { %2774 = vst.msk [vmem:[%s3918_s6 + $0x60] sm:$0xf] %vm1049_vm0, %v1215_v5  ;;  %2808 = vst.msk [vmem:[%s3918_s6 + $0x88] sm:$0xf] %vm1049_vm0, %v1450_v7  ;;  %v3190_v5 = vunpack.i.h.bf16 %v4396_v63 }
 0x335   : > { %1402 = vrot.lane.b32.xlu0 %v4040_v46, %s3495_s17 }
 0x336   : > { %1327 = vxpose.xlu1.b32.start [1/16] (narrow) %v3144_v23, 32 }
 0x337   : > { %v1462_v60 = vpop.permute.xlu1 %1461  ;;  %v1681_v30 = vpop.permute.xlu0 %1680 }
 0x338   : > { %2814 = vst.msk [vmem:[%s3918_s6 + $0xa0] sm:$0xf] %vm1049_vm0, %v1462_v60  ;;  %2848 = vst.msk [vmem:[%s3918_s6 + $0xc8] sm:$0xf] %vm1049_vm0, %v1681_v30 }
 0x339   : > { %1633 = vrot.lane.b32.xlu0 %v4040_v46, %s3496_s20 }
 0x33a   : > { %1328 = vxpose.xlu1.b32.cont [2/16] (narrow) %v3145_v24, 32 }
 0x33b   : > { %v3203_v1 = vpop.permute.xlu1 %3202  ;;  %v1393_v8 = vpop.permute.xlu0 %1392 }
 0x33c   : > { %2796 = vst.msk [vmem:[%s3945_s19 + $0x58] sm:$0xf] %vm1049_vm0, %v1393_v8  ;;  %v3204_v23 = vunpack.i.l.bf16 %v3203_v1  ;;  %v3205_v30 = vunpack.i.h.bf16 %v3203_v1 }
 0x33d   : > { %1864 = vrot.lane.b32.xlu0 %v4040_v46, %s3494_s10 }
 0x33e   : > { %1329 = vxpose.xlu1.b32.cont [3/16] (narrow) %v3159_v39, 32 }
 0x33f   : > { %v4433_v21 = vpop.permute.xlu1 %3207  ;;  %v4435_v34 = vpop.permute.xlu0 %3162 }
 0x341   : > { %1398 = vrot.lane.b32.xlu0 %v4052_v9, %s3495_s17 }
 0x342   : > { %1330 = vxpose.xlu1.b32.cont [4/16] (narrow) %v3160_v25, 32 }
 0x343   : > { %v1217_v10 = vpop.permute.xlu1 %1216  ;;  %v1624_v57 = vpop.permute.xlu0 %1623 }
 0x344   : > { %2775 = vst.msk [vmem:[%s3918_s6 + $0x64] sm:$0xf] %vm1049_vm0, %v1217_v10  ;;  %2836 = vst.msk [vmem:[%s3945_s19 + $0x98] sm:$0xf] %vm1049_vm0, %v1624_v57 }
 0x345   : > { %1629 = vrot.lane.b32.xlu0 %v4052_v9, %s3496_s20 }
 0x346   : > { %1331 = vxpose.xlu1.b32.cont [5/16] (narrow) %v3174_v17, 32 }
 0x347   : > { %v1695_v46 = vpop.permute.xlu1 %1694  ;;  %v4447_v53 = vpop.permute.xlu0 %3167 }
 0x348   : > { %2855 = vst.msk [vmem:[%s3918_s6 + $0xe4] sm:$0xf] %vm1049_vm0, %v1695_v46 }
 0x349   : > { %1860 = vrot.lane.b32.xlu0 %v4052_v9, %s3494_s10 }
 0x34a   : > { %1332 = vxpose.xlu1.b32.cont [6/16] (narrow) %v3175_v36, 32 }
 0x34b   : > { %v1219_v4 = vpop.permute.xlu1 %1218  ;;  %v1855_v18 = vpop.permute.xlu0 %1854 }
 0x34c   : > { %2776 = vst.msk [vmem:[%s3918_s6 + $0x68] sm:$0xf] %vm1049_vm0, %v1219_v4  ;;  %2876 = vst.msk [vmem:[%s3945_s19 + $0xd8] sm:$0xf] %vm1049_vm0, %v1855_v18 }
 0x34d   : > { %1457 = vrot.lane.b32.xlu0 %v4057_v41, %s3496_s20 }
 0x34e   : > { %1333 = vxpose.xlu1.b32.cont [7/16] (narrow) %v3189_v2, 32 }
 0x34f   : > { %v1466_v56 = vpop.permute.xlu1 %1465  ;;  %v1389_v0 = vpop.permute.xlu0 %1388 }
 0x350   : > { %2816 = vst.msk [vmem:[%s3918_s6 + $0xa8] sm:$0xf] %vm1049_vm0, %v1466_v56  ;;  %2794 = vst.msk [vmem:[%s3945_s19 + $0x50] sm:$0xf] %vm1049_vm0, %v1389_v0 }
 0x351   : > { %1688 = vrot.lane.b32.xlu0 %v4057_v41, %s3494_s10 }
 0x352   : > { %1334 = vxpose.xlu1.b32.cont [8/16] (narrow) %v3190_v5, 32 }
 0x353   : > { %v3218_v9 = vpop.permute.xlu1 %3217  ;;  %v1452_v7 = vpop.permute.xlu0 %1451 }
 0x354   : > { %2809 = vst.msk [vmem:[%s3918_s6 + $0x8c] sm:$0xf] %vm1049_vm0, %v1452_v7  ;;  %v3219_v8 = vunpack.i.l.bf16 %v3218_v9  ;;  %v3220_v25 = vunpack.i.h.bf16 %v3218_v9 }
 0x355   : > { %1408 = vrot.lane.b32.xlu0 %v4083_v47, %s3495_s17 }
 0x356   : > { %1335 = vxpose.xlu1.b32.cont [9/16] (narrow) %v3204_v23, 32 }
 0x357   : > { %v4472_v63 = vpop.permute.xlu1 %3227  ;;  %v1620_v60 = vpop.permute.xlu0 %1619 }
 0x358   : > { %2834 = vst.msk [vmem:[%s3945_s19 + $0x90] sm:$0xf] %vm1049_vm0, %v1620_v60 }
 0x359   : > { %3192 = vrot.lane.b32.xlu0 %v4204_v20, %s3496_s20 }
 0x35a   : > { %1336 = vxpose.xlu1.b32.cont [10/16] (narrow) %v3205_v30, 32 }
 0x35b   : > { %v1221_v41 = vpop.permute.xlu1 %1220  ;;  %v1683_v24 = vpop.permute.xlu0 %1682 }
 0x35c   : > { %2777 = vst.msk [vmem:[%s3918_s6 + $0x6c] sm:$0xf] %vm1049_vm0, %v1221_v41  ;;  %2849 = vst.msk [vmem:[%s3918_s6 + $0xcc] sm:$0xf] %vm1049_vm0, %v1683_v24 }
 0x35d   : > { %1639 = vrot.lane.b32.xlu0 %v4083_v47, %s3496_s20 }
 0x35e   : > { %1337 = vxpose.xlu1.b32.cont [11/16] (narrow) %v3219_v8, 32 }
 0x35f   : > { %v1223_v1 = vpop.permute.xlu1 %1222  ;;  %v1851_v39 = vpop.permute.xlu0 %1850 }
 0x360   : > { %2778 = vst.msk [vmem:[%s3918_s6 + $0x70] sm:$0xf] %vm1049_vm0, %v1223_v1  ;;  %2874 = vst.msk [vmem:[%s3945_s19 + $0xd0] sm:$0xf] %vm1049_vm0, %v1851_v39 }
 0x361   : > { %1870 = vrot.lane.b32.xlu0 %v4083_v47, %s3494_s10 }
 0x362   : > { %1338 = vxpose.xlu1.b32.cont [12/16] (narrow) %v3220_v25, 32 }
 0x363   : > { %v1470_v20 = vpop.permute.xlu1 %1469  ;;  %v1395_v10 = vpop.permute.xlu0 %1394 }
 0x364   : > { %2818 = vst.msk [vmem:[%s3918_s6 + $0xb0] sm:$0xf] %vm1049_vm0, %v1470_v20  ;;  %2797 = vst.msk [vmem:[%s3945_s19 + $0x5c] sm:$0xf] %vm1049_vm0, %v1395_v10 }
 0x365   : > { %1404 = vrot.lane.b32.xlu0 %v4086_v14, %s3495_s17 }
 0x367   : > { %v3233_v57 = vpop.permute.xlu1 %3232  ;;  %v1626_v17 = vpop.permute.xlu0 %1625 }
 0x368   : > { %v3234_v46 = vunpack.i.l.bf16 %v3233_v57  ;;  %2837 = vst.msk [vmem:[%s3945_s19 + $0x9c] sm:$0xf] %vm1049_vm0, %v1626_v17  ;;  %v3235_v4 = vunpack.i.h.bf16 %v3233_v57 }
 0x369   : > { %1459 = vrot.lane.b32.xlu0 %v4072_v26, %s3496_s20 }
 0x36a   : > { %1339 = vxpose.xlu1.b32.cont [13/16] (narrow) %v3234_v46, 32 }
 0x36b   : > { %v4500_v47 = vpop.permute.xlu1 %3237  ;;  %v1857_v36 = vpop.permute.xlu0 %1856 }
 0x36c   : > { %2877 = vst.msk [vmem:[%s3945_s19 + $0xdc] sm:$0xf] %vm1049_vm0, %v1857_v36 }
 0x36d   : > { %1635 = vrot.lane.b32.xlu0 %v4086_v14, %s3496_s20 }
 0x36e   : > { %1340 = vxpose.xlu1.b32.cont [14/16] (narrow) %v3235_v4, 32 }
 0x36f   : > { %v1225_v18 = vpop.permute.xlu1 %1224  ;;  %v1391_v2 = vpop.permute.xlu0 %1390 }
 0x370   : > { %2779 = vst.msk [vmem:[%s3918_s6 + $0x74] sm:$0xf] %vm1049_vm0, %v1225_v18  ;;  %2795 = vst.msk [vmem:[%s3945_s19 + $0x54] sm:$0xf] %vm1049_vm0, %v1391_v2 }
 0x371   : > { %1690 = vrot.lane.b32.xlu0 %v4072_v26, %s3494_s10 }
 0x373   : > { %v1227_v56 = vpop.permute.xlu1 %1226  ;;  %v1622_v0 = vpop.permute.xlu0 %1621 }
 0x374   : > { %2780 = vst.msk [vmem:[%s3918_s6 + $0x78] sm:$0xf] %vm1049_vm0, %v1227_v56  ;;  %2835 = vst.msk [vmem:[%s3945_s19 + $0x94] sm:$0xf] %vm1049_vm0, %v1622_v0 }
 0x375   : > { %1866 = vrot.lane.b32.xlu0 %v4086_v14, %s3494_s10 }
 0x377   : > { %v1474_v5 = vpop.permute.xlu1 %1473  ;;  %v1853_v9 = vpop.permute.xlu0 %1852 }
 0x378   : > { %2820 = vst.msk [vmem:[%s3918_s6 + $0xb8] sm:$0xf] %vm1049_vm0, %v1474_v5  ;;  %2875 = vst.msk [vmem:[%s3945_s19 + $0xd4] sm:$0xf] %vm1049_vm0, %v1853_v9  ;;  %v3149_v9 = vunpack.i.l.bf16 %v4324_v62 }
 0x379   : > { %1410 = vrot.lane.b32.xlu0 %v4092_v55, %s3495_s17 }
 0x37b   : > { %v4524_v26 = vpop.permute.xlu1 %3257  ;;  %v1454_v7 = vpop.permute.xlu0 %1453 }
 0x37c   : > { %2810 = vst.msk [vmem:[%s3918_s6 + $0x90] sm:$0xf] %vm1049_vm0, %v1454_v7  ;;  %v3150_v7 = vunpack.i.h.bf16 %v4324_v62 }
 0x37d   : > { %1641 = vrot.lane.b32.xlu0 %v4092_v55, %s3496_s20 }
 0x37f   : > { %v1229_v14 = vpop.permute.xlu1 %1228  ;;  %v1685_v23 = vpop.permute.xlu0 %1684 }
 0x380   : > { %2781 = vst.msk [vmem:[%s3918_s6 + $0x7c] sm:$0xf] %vm1049_vm0, %v1229_v14  ;;  %2850 = vst.msk [vmem:[%s3918_s6 + $0xd0] sm:$0xf] %vm1049_vm0, %v1685_v23  ;;  %v3164_v14 = vunpack.i.l.bf16 %v4435_v34  ;;  %v3165_v23 = vunpack.i.h.bf16 %v4435_v34  ;;  %v3210_v34 = vunpack.i.h.bf16 %v4433_v21 }
 0x381   : > { %1406 = vrot.lane.b32.xlu0 %v4102_v6, %s3495_s17 }
 0x383   : > { %v1401_v60 = vpop.permute.xlu0 %1400 }
 0x384   : > { %2800 = vst.msk [vmem:[%s3945_s19 + $0x68] sm:$0xf] %vm1049_vm0, %v1401_v60  ;;  %v3179_v60 = vunpack.i.l.bf16 %v4378_v43 }
 0x385   : > { %1637 = vrot.lane.b32.xlu0 %v4102_v6, %s3496_s20 }
 0x387   : > { %v1632_v30 = vpop.permute.xlu0 %1631 }
 0x388   : > { %2840 = vst.msk [vmem:[%s3945_s19 + $0xa8] sm:$0xf] %vm1049_vm0, %v1632_v30  ;;  %v3180_v30 = vunpack.i.h.bf16 %v4378_v43 }
 0x389   : > { %1868 = vrot.lane.b32.xlu0 %v4102_v6, %s3494_s10 }
 0x38b   : > { %v4544_v41 = vpop.permute.xlu0 %3182 }
 0x38d   : > { %1692 = vrot.lane.b32.xlu0 %v4113_v51, %s3494_s10 }
 0x38f   : > { %v1863_v24 = vpop.permute.xlu0 %1862 }
 0x390   : > { %2880 = vst.msk [vmem:[%s3945_s19 + $0xe8] sm:$0xf] %vm1049_vm0, %v1863_v24 }
 0x391   : > { %3212 = vrot.lane.b32.xlu0 %v4246_v33, %s3494_s10 }
 0x393   : > { %v1397_v8 = vpop.permute.xlu0 %1396 }
 0x394   : > { %2798 = vst.msk [vmem:[%s3945_s19 + $0x60] sm:$0xf] %vm1049_vm0, %v1397_v8  ;;  %v3209_v8 = vunpack.i.l.bf16 %v4433_v21 }
 0x395   : > { %1463 = vrot.lane.b32.xlu0 %v4129_v59, %s3496_s20 }
 0x397   : > { %v1456_v6 = vpop.permute.xlu0 %1455 }
 0x398   : > { %2811 = vst.msk [vmem:[%s3918_s6 + $0x94] sm:$0xf] %vm1049_vm0, %v1456_v6 }
 0x399   : > { %1696 = vrot.lane.b32.xlu0 %v4150_v12, %s3494_s10 }
 0x39b   : > { %v1628_v51 = vpop.permute.xlu0 %1627 }
 0x39c   : > { %2838 = vst.msk [vmem:[%s3945_s19 + $0xa0] sm:$0xf] %vm1049_vm0, %v1628_v51 }
 0x39d   : > { %3222 = vrot.lane.b32.xlu0 %v4274_v11, %s3496_s20 }
 0x39f   : > { %v1687_v33 = vpop.permute.xlu0 %1686 }
 0x3a0   : > { %2851 = vst.msk [vmem:[%s3918_s6 + $0xd4] sm:$0xf] %vm1049_vm0, %v1687_v33 }
 0x3a1   : > { %1467 = vrot.lane.b32.xlu0 %v4159_v13, %s3496_s20 }
 0x3a3   : > { %v1859_v59 = vpop.permute.xlu0 %1858 }
 0x3a4   : > { %2878 = vst.msk [vmem:[%s3945_s19 + $0xe0] sm:$0xf] %vm1049_vm0, %v1859_v59  ;;  %v3240_v59 = vunpack.i.h.bf16 %v4500_v47 }
 0x3a5   : > { %1698 = vrot.lane.b32.xlu0 %v4159_v13, %s3494_s10 }
 0x3a7   : > { %v1403_v12 = vpop.permute.xlu0 %1402 }
 0x3a8   : > { %2801 = vst.msk [vmem:[%s3945_s19 + $0x6c] sm:$0xf] %vm1049_vm0, %v1403_v12 }
 0x3a9   : > { %1700 = vrot.lane.b32.xlu0 %v4180_v29, %s3494_s10 }
 0x3ab   : > { %v1634_v11 = vpop.permute.xlu0 %1633 }
 0x3ac   : > { %2841 = vst.msk [vmem:[%s3945_s19 + $0xac] sm:$0xf] %vm1049_vm0, %v1634_v11 }
 0x3ad   : > { %3242 = vrot.lane.b32.xlu0 %v4298_v32, %s3494_s10 }
 0x3af   : > { %v1865_v1 = vpop.permute.xlu0 %1864 }
 0x3b0   : > { %2881 = vst.msk [vmem:[%s3945_s19 + $0xec] sm:$0xf] %vm1049_vm0, %v1865_v1 }
 0x3b1   : > { %1471 = vrot.lane.b32.xlu0 %v4193_v38, %s3496_s20 }
 0x3b3   : > { %v1399_v13 = vpop.permute.xlu0 %1398 }
 0x3b4   : > { %2799 = vst.msk [vmem:[%s3945_s19 + $0x64] sm:$0xf] %vm1049_vm0, %v1399_v13 }
 0x3b5   : > { %1702 = vrot.lane.b32.xlu0 %v4193_v38, %s3494_s10 }
 0x3b7   : > { %v1630_v29 = vpop.permute.xlu0 %1629 }
 0x3b8   : > { %2839 = vst.msk [vmem:[%s3945_s19 + $0xa4] sm:$0xf] %vm1049_vm0, %v1630_v29 }
 0x3b9   : > { %1704 = vrot.lane.b32.xlu0 %v4214_v45, %s3494_s10 }
 0x3bb   : > { %v1861_v32 = vpop.permute.xlu0 %1860 }
 0x3bc   : > { %2879 = vst.msk [vmem:[%s3945_s19 + $0xe4] sm:$0xf] %vm1049_vm0, %v1861_v32  ;;  %v3154_v32 = vunpack.i.l.bf16 %v4326_v35 }
 0x3bd   : > { %3247 = vrot.lane.b32.xlu0 %v4342_v16, %s3495_s17 }
 0x3bf   : > { %v1458_v39 = vpop.permute.xlu0 %1457 }
 0x3c0   : > { %2812 = vst.msk [vmem:[%s3918_s6 + $0x98] sm:$0xf] %vm1049_vm0, %v1458_v39  ;;  %v3155_v39 = vunpack.i.h.bf16 %v4326_v35  ;;  %v3199_v35 = vunpack.i.l.bf16 %v4402_v50 }
 0x3c1   : > { %3252 = vrot.lane.b32.xlu0 %v4342_v16, %s3496_s20 }
 0x3c3   : > { %v1689_v38 = vpop.permute.xlu0 %1688 }
 0x3c4   : > { %2852 = vst.msk [vmem:[%s3918_s6 + $0xd8] sm:$0xf] %vm1049_vm0, %v1689_v38 }
 0x3c5   : > { %1475 = vrot.lane.b32.xlu0 %v4223_v28, %s3496_s20 }
 0x3c7   : > { %v1409_v45 = vpop.permute.xlu0 %1408 }
 0x3c8   : > { %2804 = vst.msk [vmem:[%s3945_s19 + $0x78] sm:$0xf] %vm1049_vm0, %v1409_v45 }
 0x3c9   : > { %1706 = vrot.lane.b32.xlu0 %v4223_v28, %s3494_s10 }
 0x3cb   : > { %v4608_v25 = vpop.permute.xlu0 %3192 }
 0x3cc   : > { %v3194_v62 = vunpack.i.l.bf16 %v4608_v25  ;;  %v3195_v24 = vunpack.i.h.bf16 %v4608_v25  ;;  %v3169_v25 = vunpack.i.l.bf16 %v4447_v53 }
 0x3cf   : > { %v1640_v20 = vpop.permute.xlu0 %1639 }
 0x3d0   : > { %2844 = vst.msk [vmem:[%s3945_s19 + $0xb8] sm:$0xf] %vm1049_vm0, %v1640_v20 }
 0x3d3   : > { %v1871_v16 = vpop.permute.xlu0 %1870 }
 0x3d4   : > { %2884 = vst.msk [vmem:[%s3945_s19 + $0xf8] sm:$0xf] %vm1049_vm0, %v1871_v16  ;;  %v3170_v16 = vunpack.i.h.bf16 %v4447_v53 }
 0x3d7   : > { %v1405_v10 = vpop.permute.xlu0 %1404 }
 0x3d8   : > { %2802 = vst.msk [vmem:[%s3945_s19 + $0x70] sm:$0xf] %vm1049_vm0, %v1405_v10 }
 0x3db   : > { %v1460_v57 = vpop.permute.xlu0 %1459 }
 0x3dc   : > { %2813 = vst.msk [vmem:[%s3918_s6 + $0x9c] sm:$0xf] %vm1049_vm0, %v1460_v57 }
 0x3df   : > { %v1636_v17 = vpop.permute.xlu0 %1635 }
 0x3e0   : > { %2842 = vst.msk [vmem:[%s3945_s19 + $0xb0] sm:$0xf] %vm1049_vm0, %v1636_v17  ;;  %v3184_v17 = vunpack.i.l.bf16 %v4544_v41 }
 0x3e3   : > { %v1691_v28 = vpop.permute.xlu0 %1690 }
 0x3e4   : > { %2853 = vst.msk [vmem:[%s3918_s6 + $0xdc] sm:$0xf] %vm1049_vm0, %v1691_v28  ;;  %v3185_v28 = vunpack.i.h.bf16 %v4544_v41  ;;  %v3230_v41 = vunpack.i.h.bf16 %v4472_v63 }
 0x3e7   : > { %1066 = vxpose.xlu0.b32.start [1/16] (narrow) %v3941_v31, 32  ;;  %v1867_v46 = vpop.permute.xlu0 %1866 }
 0x3e8   : > { %2882 = vst.msk [vmem:[%s3945_s19 + $0xf0] sm:$0xf] %vm1049_vm0, %v1867_v46  ;;  %v3200_v46 = vunpack.i.h.bf16 %v4402_v50 }
 0x3eb   : > { %1067 = vxpose.xlu0.b32.cont [2/16] (narrow) %v3934_v49, 32  ;;  %v1411_v36 = vpop.permute.xlu0 %1410 }
 0x3ec   : > { %2805 = vst.msk [vmem:[%s3945_s19 + $0x7c] sm:$0xf] %vm1049_vm0, %v1411_v36 }
 0x3ef   : > { %1068 = vxpose.xlu0.b32.cont [3/16] (narrow) %v4035_v40, 32  ;;  %v1642_v4 = vpop.permute.xlu0 %1641 }
 0x3f0   : > { %2845 = vst.msk [vmem:[%s3945_s19 + $0xbc] sm:$0xf] %vm1049_vm0, %v1642_v4  ;;  %v3229_v4 = vunpack.i.l.bf16 %v4472_v63 }
 0x3f3   : > { %1069 = vxpose.xlu0.b32.cont [4/16] (narrow) %v4023_v22, 32  ;;  %v1407_v18 = vpop.permute.xlu0 %1406 }
 0x3f4   : > { %2803 = vst.msk [vmem:[%s3945_s19 + $0x74] sm:$0xf] %vm1049_vm0, %v1407_v18 }
 0x3f7   : > { %1070 = vxpose.xlu0.b32.cont [5/16] (narrow) %v4124_v58, 32  ;;  %v1638_v31 = vpop.permute.xlu0 %1637 }
 0x3f8   : > { %2843 = vst.msk [vmem:[%s3945_s19 + $0xb4] sm:$0xf] %vm1049_vm0, %v1638_v31  ;;  %v3259_v31 = vunpack.i.l.bf16 %v4524_v26 }
 0x3fb   : > { %1071 = vxpose.xlu0.b32.cont [6/16] (narrow) %v4108_v48, 32  ;;  %v1869_v49 = vpop.permute.xlu0 %1868 }
 0x3fc   : > { %2883 = vst.msk [vmem:[%s3945_s19 + $0xf4] sm:$0xf] %vm1049_vm0, %v1869_v49  ;;  %v3260_v49 = vunpack.i.h.bf16 %v4524_v26 }
 0x3ff   : > { %1072 = vxpose.xlu0.b32.cont [7/16] (narrow) %v4188_v37, 32  ;;  %v1693_v40 = vpop.permute.xlu0 %1692 }
 0x400   : > { %2854 = vst.msk [vmem:[%s3918_s6 + $0xe0] sm:$0xf] %vm1049_vm0, %v1693_v40 }
 0x403   : > { %1073 = vxpose.xlu0.b32.cont [8/16] (narrow) %v4178_v27, 32  ;;  %v4644_v22 = vpop.permute.xlu0 %3212 }
 0x404   : > { %v3214_v36 = vunpack.i.l.bf16 %v4644_v22  ;;  %v3215_v53 = vunpack.i.h.bf16 %v4644_v22 }
 0x407   : > { %1074 = vxpose.xlu0.b32.cont [9/16] (narrow) %v4105_v44, 32  ;;  %v1464_v58 = vpop.permute.xlu0 %1463 }
 0x408   : > { %2815 = vst.msk [vmem:[%s3918_s6 + $0xa4] sm:$0xf] %vm1049_vm0, %v1464_v58 }
 0x40b   : > { %1075 = vxpose.xlu0.b32.cont [10/16] (narrow) %v4120_v54, 32  ;;  %v1697_v48 = vpop.permute.xlu0 %1696 }
 0x40c   : > { %2856 = vst.msk [vmem:[%s3918_s6 + $0xe8] sm:$0xf] %vm1049_vm0, %v1697_v48 }
 0x40f   : > { %1076 = vxpose.xlu0.b32.cont [11/16] (narrow) %v4148_v61, 32  ;;  %v3223_v37 = vpop.permute.xlu0 %3222 }
 0x410   : > { %v3224_v6 = vunpack.i.l.bf16 %v3223_v37  ;;  %v3225_v43 = vunpack.i.h.bf16 %v3223_v37 }
 0x413   : > { %1077 = vxpose.xlu0.b32.cont [12/16] (narrow) %v4154_v3, 32  ;;  %v1468_v27 = vpop.permute.xlu0 %1467 }
 0x414   : > { %2817 = vst.msk [vmem:[%s3918_s6 + $0xac] sm:$0xf] %vm1049_vm0, %v1468_v27 }
 0x417   : > { %1078 = vxpose.xlu0.b32.cont [13/16] (narrow) %v4174_v19, 32  ;;  %v1699_v44 = vpop.permute.xlu0 %1698 }
 0x418   : > { %2857 = vst.msk [vmem:[%s3918_s6 + $0xec] sm:$0xf] %vm1049_vm0, %v1699_v44 }
 0x41b   : > { %1079 = vxpose.xlu0.b32.cont [14/16] (narrow) %v4184_v15, 32  ;;  %v1701_v54 = vpop.permute.xlu0 %1700 }
 0x41c   : > { %2858 = vst.msk [vmem:[%s3918_s6 + $0xf0] sm:$0xf] %vm1049_vm0, %v1701_v54 }
 0x41f   : > { %1080 = vxpose.xlu0.b32.cont [15/16] (narrow) %v4212_v42, 32  ;;  %v4663_v61 = vpop.permute.xlu0 %3242 }
 0x420   : > { %v3244_v18 = vunpack.i.l.bf16 %v4663_v61  ;;  %v3245_v50 = vunpack.i.h.bf16 %v4663_v61 }
 0x423   : > { %1081 = vxpose.xlu0.b32.end [16/16] (narrow) %v4218_v52, 32  ;;  %v1472_v3 = vpop.permute.xlu0 %1471 }
 0x424   : > { %2819 = vst.msk [vmem:[%s3918_s6 + $0xb4] sm:$0xf] %vm1049_vm0, %v1472_v3 }
 0x427   : > { %v1703_v2 = vpop.permute.xlu0 %1702 }
 0x428   : > { %2859 = vst.msk [vmem:[%s3918_s6 + $0xf4] sm:$0xf] %vm1049_vm0, %v1703_v2 }
 0x42b   : > { %v1705_v19 = vpop.permute.xlu0 %1704 }
 0x42c   : > { %2860 = vst.msk [vmem:[%s3918_s6 + $0xf8] sm:$0xf] %vm1049_vm0, %v1705_v19  ;;  %v1943_v19 = vld [vmem:[%s3918_s6] sm:$0xff] (%p3645_p11)  }
 0x42d   : > { %1944 = vst [vmem:[%s4736_s15] sm:$0xff] (%p3645_p11), %v1943_v19  }
 0x42f   : > { %v3248_v15 = vpop.permute.xlu0 %3247 }
 0x430   : > { %v3249_v56 = vunpack.i.l.bf16 %v3248_v15  ;;  %v3250_v42 = vunpack.i.h.bf16 %v3248_v15  ;;  %v1947_v15 = vld [vmem:[%s3918_s6 + $0x8] sm:$0xff] (%p3645_p11)  }
 0x431   : > { %1948 = vst [vmem:[%s4736_s15 + $0x8] sm:$0xff] (%p3645_p11), %v1947_v15  }
 0x432   : > { %1341 = vxpose.xlu1.b32.cont [15/16] (narrow) %v3249_v56, 32  ;;  %v1951_v56 = vld [vmem:[%s3918_s6 + $0x10] sm:$0xff] (%p3645_p11)  }
 0x433   : > { %v3253_v0 = vpop.permute.xlu0 %3252  ;;  %1952 = vst [vmem:[%s4736_s15 + $0x10] sm:$0xff] (%p3645_p11), %v1951_v56  }
 0x434   : > { %v3254_v11 = vunpack.i.l.bf16 %v3253_v0  ;;  %v3255_v13 = vunpack.i.h.bf16 %v3253_v0  ;;  %v1955_v0 = vld [vmem:[%s3918_s6 + $0x18] sm:$0xff] (%p3645_p11)  }
 0x435   : > { %1956 = vst [vmem:[%s4736_s15 + $0x18] sm:$0xff] (%p3645_p11), %v1955_v0  }
 0x436   : > { %1342 = vxpose.xlu1.b32.end [16/16] (narrow) %v3250_v42, 32  ;;  %v1959_v42 = vld [vmem:[%s3918_s6 + $0x20] sm:$0xff] (%p3645_p11)  }
 0x437   : > { %v1476_v5 = vpop.permute.xlu0 %1475  ;;  %1960 = vst [vmem:[%s4736_s15 + $0x20] sm:$0xff] (%p3645_p11), %v1959_v42  }
 0x438   : > { %2821 = vst.msk [vmem:[%s3918_s6 + $0xbc] sm:$0xf] %vm1049_vm0, %v1476_v5  ;;  %v1963_v5 = vld [vmem:[%s3918_s6 + $0x28] sm:$0xff] (%p3645_p11)  }
 0x439   : > { %1964 = vst [vmem:[%s4736_s15 + $0x28] sm:$0xff] (%p3645_p11), %v1963_v5  }
 0x43a   : > { %1558 = vxpose.xlu1.b32.start [1/16] (narrow) %v3149_v9, 32  ;;  %v1967_v9 = vld [vmem:[%s3918_s6 + $0x30] sm:$0xff] (%p3645_p11)  }
 0x43b   : > { %v1707_v52 = vpop.permute.xlu0 %1706  ;;  %1968 = vst [vmem:[%s4736_s15 + $0x30] sm:$0xff] (%p3645_p11), %v1967_v9  }
 0x43c   : > { %2861 = vst.msk [vmem:[%s3918_s6 + $0xfc] sm:$0xf] %vm1049_vm0, %v1707_v52  ;;  %v1971_v52 = vld [vmem:[%s3918_s6 + $0x38] sm:$0xff] (%p3645_p11)  }
 0x43d   : > { %1972 = vst [vmem:[%s4736_s15 + $0x38] sm:$0xff] (%p3645_p11), %v1971_v52  }
 0x43e   : > { %1559 = vxpose.xlu1.b32.cont [2/16] (narrow) %v3150_v7, 32  ;;  %v1975_v7 = vld [vmem:[%s3918_s6 + $0x40] sm:$0xff] (%p3645_p11)  }
 0x43f   : > { %1976 = vst [vmem:[%s4736_s15 + $0x80] sm:$0xff] (%p3645_p11), %v1975_v7  }
 0x442   : > { %1560 = vxpose.xlu1.b32.cont [3/16] (narrow) %v3164_v14, 32  ;;  %v1979_v14 = vld [vmem:[%s3918_s6 + $0x48] sm:$0xff] (%p3645_p11)  }
 0x443   : > { %1980 = vst [vmem:[%s4736_s15 + $0x88] sm:$0xff] (%p3645_p11), %v1979_v14  }
 0x446   : > { %1561 = vxpose.xlu1.b32.cont [4/16] (narrow) %v3165_v23, 32  ;;  %v1983_v23 = vld [vmem:[%s3918_s6 + $0x50] sm:$0xff] (%p3645_p11)  }
 0x447   : > { %1984 = vst [vmem:[%s4736_s15 + $0x90] sm:$0xff] (%p3645_p11), %v1983_v23  }
 0x44a   : > { %1562 = vxpose.xlu1.b32.cont [5/16] (narrow) %v3179_v60, 32  ;;  %v1987_v60 = vld [vmem:[%s3918_s6 + $0x58] sm:$0xff] (%p3645_p11)  }
 0x44b   : > { %1988 = vst [vmem:[%s4736_s15 + $0x98] sm:$0xff] (%p3645_p11), %v1987_v60  }
 0x44c   : > { %1872 = vrot.lane.b32.xlu0 %v4092_v55, %s3494_s10  ;;  %v3239_v55 = vunpack.i.l.bf16 %v4500_v47 }
 0x44e   : > { %1563 = vxpose.xlu1.b32.cont [6/16] (narrow) %v3180_v30, 32  ;;  %v1991_v30 = vld [vmem:[%s3918_s6 + $0x60] sm:$0xff] (%p3645_p11)  }
 0x44f   : > { %1992 = vst [vmem:[%s4736_s15 + $0xa0] sm:$0xff] (%p3645_p11), %v1991_v30  }
 0x452   : > { %1564 = vxpose.xlu1.b32.cont [7/16] (narrow) %v3194_v62, 32  ;;  %v1995_v62 = vld [vmem:[%s3918_s6 + $0x68] sm:$0xff] (%p3645_p11)  }
 0x453   : > { %1996 = vst [vmem:[%s4736_s15 + $0xa8] sm:$0xff] (%p3645_p11), %v1995_v62  }
 0x456   : > { %1565 = vxpose.xlu1.b32.cont [8/16] (narrow) %v3195_v24, 32  ;;  %v1999_v24 = vld [vmem:[%s3918_s6 + $0x70] sm:$0xff] (%p3645_p11)  }
 0x457   : > { %2000 = vst [vmem:[%s4736_s15 + $0xb0] sm:$0xff] (%p3645_p11), %v1999_v24  }
 0x45a   : > { %1566 = vxpose.xlu1.b32.cont [9/16] (narrow) %v3209_v8, 32  ;;  %v2003_v8 = vld [vmem:[%s3918_s6 + $0x78] sm:$0xff] (%p3645_p11)  }
 0x45b   : > { %2004 = vst [vmem:[%s4736_s15 + $0xb8] sm:$0xff] (%p3645_p11), %v2003_v8  }
 0x45e   : > { %1567 = vxpose.xlu1.b32.cont [10/16] (narrow) %v3210_v34, 32  ;;  %v2007_v34 = vld [vmem:[%s3918_s6 + $0x80] sm:$0xff] (%p3645_p11)  }
 0x45f   : > { %2008 = vst [vmem:[%s4736_s15 + $0x100] sm:$0xff] (%p3645_p11), %v2007_v34  }
 0x462   : > { %1568 = vxpose.xlu1.b32.cont [11/16] (narrow) %v3224_v6, 32  ;;  %v2011_v6 = vld [vmem:[%s3918_s6 + $0x88] sm:$0xff] (%p3645_p11)  }
 0x463   : > { %2012 = vst [vmem:[%s4736_s15 + $0x108] sm:$0xff] (%p3645_p11), %v2011_v6  }
 0x466   : > { %1569 = vxpose.xlu1.b32.cont [12/16] (narrow) %v3225_v43, 32  ;;  %v2015_v43 = vld [vmem:[%s3918_s6 + $0x90] sm:$0xff] (%p3645_p11)  }
 0x467   : > { %v1082_v51 = vpop.trf.xlu0  ;;  %2016 = vst [vmem:[%s4736_s15 + $0x110] sm:$0xff] (%p3645_p11), %v2015_v43  }
 0x46a   : > { %1570 = vxpose.xlu1.b32.cont [13/16] (narrow) %v3239_v55, 32  ;;  %v2023_v55 = vld [vmem:[%s3918_s6 + $0xa0] sm:$0xff] (%p3645_p11)  }
 0x46b   : > { %v1083_v33 = vpop.trf.xlu0  ;;  %2024 = vst [vmem:[%s4736_s15 + $0x120] sm:$0xff] (%p3645_p11), %v2023_v55  }
 0x46c   : > { %v2950_v12 = vpack.c.bf16 %v1083_v33, %v1082_v51  ;;  %v2019_v51 = vld [vmem:[%s3918_s6 + $0x98] sm:$0xff] (%p3645_p11)   ;;  %v2027_v33 = vld [vmem:[%s3918_s6 + $0xa8] sm:$0xff] (%p3645_p11)  }
 0x46d   : > { %2020 = vst [vmem:[%s4736_s15 + $0x118] sm:$0xff] (%p3645_p11), %v2019_v51   ;;  %2028 = vst [vmem:[%s4736_s15 + $0x128] sm:$0xff] (%p3645_p11), %v2027_v33  }
 0x46e   : > { %1571 = vxpose.xlu1.b32.cont [14/16] (narrow) %v3240_v59, 32  ;;  %2951 = vst [vmem:[%s4691_s22] sm:$0xff] %v2950_v12   ;;  %v2031_v59 = vld [vmem:[%s3918_s6 + $0xb0] sm:$0xff] (%p3645_p11)   ;;  %v2035_v12 = vld [vmem:[%s3918_s6 + $0xb8] sm:$0xff] (%p3645_p11)  }
 0x46f   : > { %v1084_v21 = vpop.trf.xlu0  ;;  %2032 = vst [vmem:[%s4736_s15 + $0x130] sm:$0xff] (%p3645_p11), %v2031_v59   ;;  %2036 = vst [vmem:[%s4736_s15 + $0x138] sm:$0xff] (%p3645_p11), %v2035_v12  }
 0x472   : > { %1572 = vxpose.xlu1.b32.cont [15/16] (narrow) %v3254_v11, 32  ;;  %v2043_v11 = vld [vmem:[%s3918_s6 + $0xc8] sm:$0xff] (%p3645_p11)  }
 0x473   : > { %v1085_v1 = vpop.trf.xlu0  ;;  %2044 = vst [vmem:[%s4736_s15 + $0x188] sm:$0xff] (%p3645_p11), %v2043_v11  }
 0x474   : > { %v2955_v29 = vpack.c.bf16 %v1085_v1, %v1084_v21  ;;  %v2039_v21 = vld [vmem:[%s3918_s6 + $0xc0] sm:$0xff] (%p3645_p11)   ;;  %v2047_v1 = vld [vmem:[%s3918_s6 + $0xd0] sm:$0xff] (%p3645_p11)  }
 0x475   : > { %2040 = vst [vmem:[%s4736_s15 + $0x180] sm:$0xff] (%p3645_p11), %v2039_v21   ;;  %2048 = vst [vmem:[%s4736_s15 + $0x190] sm:$0xff] (%p3645_p11), %v2047_v1  }
 0x476   : > { %1573 = vxpose.xlu1.b32.end [16/16] (narrow) %v3255_v13, 32  ;;  %2987 = vst [vmem:[%s4691_s22 + $0x8] sm:$0xff] %v2955_v29   ;;  %v2051_v13 = vld [vmem:[%s3918_s6 + $0xd8] sm:$0xff] (%p3645_p11)   ;;  %v2055_v29 = vld [vmem:[%s3918_s6 + $0xe0] sm:$0xff] (%p3645_p11)  }
 0x477   : > { %2052 = vst [vmem:[%s4736_s15 + $0x198] sm:$0xff] (%p3645_p11), %v2051_v13   ;;  %2056 = vst [vmem:[%s4736_s15 + $0x1a0] sm:$0xff] (%p3645_p11), %v2055_v29  }
 0x47a   : > { %1789 = vxpose.xlu1.b32.start [1/16] (narrow) %v3154_v32, 32  ;;  %v1343_v47 = vpop.trf.xlu1  ;;  %v2059_v32 = vld [vmem:[%s3918_s6 + $0xe8] sm:$0xff] (%p3645_p11)  }
 0x47b   : > { %2060 = vst [vmem:[%s4736_s15 + $0x1a8] sm:$0xff] (%p3645_p11), %v2059_v32  }
 0x47e   : > { %1790 = vxpose.xlu1.b32.cont [2/16] (narrow) %v3155_v39, 32  ;;  %v1344_v38 = vpop.trf.xlu1  ;;  %v2067_v39 = vld [vmem:[%s3918_s6 + $0xf8] sm:$0xff] (%p3645_p11)  }
 0x47f   : > { %v2960_v45 = vpack.c.bf16 %v1344_v38, %v1343_v47  ;;  %v2063_v47 = vld [vmem:[%s3918_s6 + $0xf0] sm:$0xff] (%p3645_p11)   ;;  %2068 = vst [vmem:[%s4736_s15 + $0x1b8] sm:$0xff] (%p3645_p11), %v2067_v39  }
 0x480   : > { %2064 = vst [vmem:[%s4736_s15 + $0x1b0] sm:$0xff] (%p3645_p11), %v2063_v47  }
 0x481   : > { %2988 = vst [vmem:[%s4691_s22 + $0x10] sm:$0xff] %v2960_v45  }
 0x482   : > { %1791 = vxpose.xlu1.b32.cont [3/16] (narrow) %v3169_v25, 32  ;;  %v1345_v20 = vpop.trf.xlu1 }
 0x486   : > { %1792 = vxpose.xlu1.b32.cont [4/16] (narrow) %v3170_v16, 32  ;;  %v1346_v10 = vpop.trf.xlu1 }
 0x487   : > { %v2965_v57 = vpack.c.bf16 %v1346_v10, %v1345_v20 }
 0x489   : > { %2989 = vst [vmem:[%s4691_s22 + $0x18] sm:$0xff] %v2965_v57  }
 0x48a   : > { %1793 = vxpose.xlu1.b32.cont [5/16] (narrow) %v3184_v17, 32 }
 0x48e   : > { %1794 = vxpose.xlu1.b32.cont [6/16] (narrow) %v3185_v28, 32 }
 0x492   : > { %1795 = vxpose.xlu1.b32.cont [7/16] (narrow) %v3199_v35, 32 }
 0x496   : > { %1796 = vxpose.xlu1.b32.cont [8/16] (narrow) %v3200_v46, 32 }
 0x49a   : > { %1797 = vxpose.xlu1.b32.cont [9/16] (narrow) %v3214_v36, 32 }
 0x49e   : > { %1798 = vxpose.xlu1.b32.cont [10/16] (narrow) %v3215_v53, 32 }
 0x4a2   : > { %1799 = vxpose.xlu1.b32.cont [11/16] (narrow) %v3229_v4, 32 }
 0x4a6   : > { %1800 = vxpose.xlu1.b32.cont [12/16] (narrow) %v3230_v41, 32 }
 0x4aa   : > { %1801 = vxpose.xlu1.b32.cont [13/16] (narrow) %v3244_v18, 32 }
 0x4ae   : > { %1802 = vxpose.xlu1.b32.cont [14/16] (narrow) %v3245_v50, 32 }
 0x4b2   : > { %1803 = vxpose.xlu1.b32.cont [15/16] (narrow) %v3259_v31, 32 }
 0x4b6   : > { %1804 = vxpose.xlu1.b32.end [16/16] (narrow) %v3260_v49, 32 }
 0x4ba   : > { %v1574_v40 = vpop.trf.xlu1 }
 0x4be   : > { %v1873_v22 = vpop.permute.xlu0 %1872  ;;  %v1575_v58 = vpop.trf.xlu1 }
 0x4bf   : > { %2885 = vst.msk [vmem:[%s3945_s19 + $0xfc] sm:$0xf] %vm1049_vm0, %v1873_v22  ;;  %v2970_v63 = vpack.c.bf16 %v1575_v58, %v1574_v40 }
 0x4c1   : > { %2990 = vst [vmem:[%s4691_s22 + $0x20] sm:$0xff] %v2970_v63  }
 0x4c2   : > { %v1576_v48 = vpop.trf.xlu1 }
 0x4c6   : > { %v1577_v37 = vpop.trf.xlu1 }
 0x4c7   : > { %v2975_v27 = vpack.c.bf16 %v1577_v37, %v1576_v48 }
 0x4c9   : > { %2991 = vst [vmem:[%s4691_s22 + $0x28] sm:$0xff] %v2975_v27  }
 0x4fa   : > { %v1805_v44 = vpop.trf.xlu1 }
 0x4fe   : > { %v1806_v54 = vpop.trf.xlu1 }
 0x4ff   : > { %v2980_v61 = vpack.c.bf16 %v1806_v54, %v1805_v44 }
 0x501   : > { %2992 = vst [vmem:[%s4691_s22 + $0x30] sm:$0xff] %v2980_v61  }
 0x502   : > { %v1807_v3 = vpop.trf.xlu1 }
 0x503   : > { %1922 = sbr.rel (!%p3645_p11) target bundleno = 1290 (0x50a), region = 52 }
 0x506   : > { %v1808_v26 = vpop.trf.xlu1 }
 0x507   : > { %v2985_v2 = vpack.c.bf16 %v1808_v26, %v1807_v3 }
 0x509   : > { %2993 = vst [vmem:[%s4691_s22 + $0x38] sm:$0xff] %v2985_v2  }
 0x50a PF: > { %s2892_s16 = sshll.u32 %s3473_s28, 5  ;;  %s2229_s3 = sshll.u32 %s4691_s22, 4  ;;  %s4796_s3 = int_to_ptr.vmem [resolvable:$true] %s2229_s3 }
 0x50b   : > { %s2226_s10 = sadd.s32 %s3469_s27, %s2892_s16  ;;  %s4970_s29 = sld [smem:[#allocation20_spill]] }
 0x50c   : > { %s2893_s17 = sshll.u32 %s2226_s10, 6  ;;  %s3383_s5 = scalar_lea.vmem %s4796_s3, 1024 }
 0x50d   : > { %p3384_p6 = scmp.ne.s32.totalorder %s4796_s3, %s3383_s5  ;;  %s3497_s11 = smov [#allocation8]  }
 0x50e   : > { %s3387_s13 = sshll.u32 %s3497_s11, 4  ;;  %s3388_s13 = int_to_ptr.vmem [resolvable:$false] %s3387_s13 }
 0x50f   : > { %p3385_p8 = pnand %p3384_p6, %p3645_p11  ;;  %s3389_s22 = scalar_lea.vmem %s3388_s13, 2048 }
 0x510   : > { %p3390_p12 = scmp.lt.s32.totalorder %s4796_s3, %s3388_s13  ;;  %p3391_p13 = scmp.lt.s32.totalorder %s3389_s22, %s3383_s5 }
 0x511   : > { %s4971_s9 = smov %s4970_s29  ;;  %s4801_s6 = scalar_lea.hbm %s4970_s29, %s2893_s17 }
 0x512   : > { %p3386_p10 = pneg %p3385_p8  ;;  %p3392_p3 = por %p3391_p13, %p3390_p12 }
 0x514   : > { %p3393_p7 = pnand %p3392_p3, %p3386_p10 }
 0x516   : > { %3396 = shalt.err (!%p3393_p7)
}
 0x517   : > { %s3397_s14 = scalar_lea.hbm %s4801_s6, 1024  ;;  %s3401_s10 = scalar_lea.hbm %s4971_s9, 4096 }
 0x518   : > { %p3398_p1 = scmp.ne.s32.totalorder %s4801_s6, %s3397_s14  ;;  %p3402_p5 = scmp.lt.u32.totalorder %s4801_s6, %s4971_s9 }
 0x519   : > { %p3403_p9 = scmp.lt.u32.totalorder %s3401_s10, %s3397_s14  ;;  %p3405_p6 = scmp.lt.u32.totalorder %s3397_s14, %s4801_s6 }
 0x51a   : > { %p3399_p2 = pnand %p3398_p1, %p3645_p11 }
 0x51b   : > { %p3404_p0 = por %p3403_p9, %p3402_p5 }
 0x51c   : > { %p3400_p4 = pneg %p3399_p2 }
 0x51d   : > { %p3406_p8 = por %p3405_p6, %p3404_p0 }
 0x51f   : > { %p3407_p10 = pnand %p3406_p8, %p3400_p4 }
 0x521   : > { %3410 = shalt.err (!%p3407_p10)
}
 0x522   : > { %s3498_s23 = smov 128   ;;  %s3499_s29 = smov 4   ;;  %v2259_v38 = vld [vmem:[%s3945_s19] sm:$0xff] (%p3645_p11)   ;;  %v2263_v45 = vld [vmem:[%s3945_s19 + $0x8] sm:$0xff] (%p3645_p11)   ;;  %v2267_v25 = vld [vmem:[%s3945_s19 + $0x10] sm:$0xff] (%p3645_p11)  }
 0x523   : > { %3048 = dma.vmem_to_hbm [thread:$0]  (%p3645_p11), %s4796_s3, 1024, %s4801_s6, %s1912_s12, %s3496_s20, %s3498_s23, %s3499_s29  }
 0x524   : > { %2238 = sbr.rel (!%p3645_p11) target bundleno = 1340 (0x53c), region = 97  ;;  %s2894_s5 = sshll.u32 (%p3645_p11), %s3469_s27, 4  ;;  %v2271_v20 = vld [vmem:[%s3945_s19 + $0x18] sm:$0xff] (%p3645_p11)   ;;  %v2275_v16 = vld [vmem:[%s3945_s19 + $0x20] sm:$0xff] (%p3645_p11)   ;;  %v2279_v10 = vld [vmem:[%s3945_s19 + $0x28] sm:$0xff] (%p3645_p11)  }
 0x525   : > { %s2895_s7 = sshll.u32 (%p3645_p11), %s3473_s28, 7  ;;  %v2283_v57 = vld [vmem:[%s3945_s19 + $0x30] sm:$0xff] (%p3645_p11)   ;;  %v2287_v17 = vld [vmem:[%s3945_s19 + $0x38] sm:$0xff] (%p3645_p11)   ;;  %v2291_v28 = vld [vmem:[%s3945_s19 + $0x40] sm:$0xff] (%p3645_p11)   ;;  %s4972_s6 = sld [smem:[#allocation21_spill]] (%p3645_p11) }
 0x526   : > { %s2241_s18 = sadd.s32 (%p3645_p11), %s2895_s7, %s2894_s5  ;;  %v2295_v35 = vld [vmem:[%s3945_s19 + $0x48] sm:$0xff] (%p3645_p11)   ;;  %v2299_v46 = vld [vmem:[%s3945_s19 + $0x50] sm:$0xff] (%p3645_p11)   ;;  %v2303_v36 = vld [vmem:[%s3945_s19 + $0x58] sm:$0xff] (%p3645_p11)  }
 0x527   : > { %s2896_s20 = sshll.u32 (%p3645_p11), %s2241_s18, 2  ;;  %v2307_v53 = vld [vmem:[%s3945_s19 + $0x60] sm:$0xff] (%p3645_p11)   ;;  %v2311_v4 = vld [vmem:[%s3945_s19 + $0x68] sm:$0xff] (%p3645_p11)   ;;  %v2315_v41 = vld [vmem:[%s3945_s19 + $0x70] sm:$0xff] (%p3645_p11)  }
 0x528   : > { %v2319_v18 = vld [vmem:[%s3945_s19 + $0x78] sm:$0xff] (%p3645_p11)   ;;  %v2323_v50 = vld [vmem:[%s3945_s19 + $0x80] sm:$0xff] (%p3645_p11)   ;;  %v2327_v31 = vld [vmem:[%s3945_s19 + $0x88] sm:$0xff] (%p3645_p11)  }
 0x529   : > { %v2331_v49 = vld [vmem:[%s3945_s19 + $0x90] sm:$0xff] (%p3645_p11)   ;;  %v2335_v40 = vld [vmem:[%s3945_s19 + $0x98] sm:$0xff] (%p3645_p11)   ;;  %v2339_v22 = vld [vmem:[%s3945_s19 + $0xa0] sm:$0xff] (%p3645_p11)  }
 0x52a   : > { %v2343_v58 = vld [vmem:[%s3945_s19 + $0xa8] sm:$0xff] (%p3645_p11)   ;;  %v2347_v63 = vld [vmem:[%s3945_s19 + $0xb0] sm:$0xff] (%p3645_p11)   ;;  %v2351_v48 = vld [vmem:[%s3945_s19 + $0xb8] sm:$0xff] (%p3645_p11)  }
 0x52b   : > { %s4843_s11 = scalar_lea.vmem %s4972_s6, %s2896_s20  ;;  %v2355_v37 = vld [vmem:[%s3945_s19 + $0xc0] sm:$0xff]   ;;  %v2359_v27 = vld [vmem:[%s3945_s19 + $0xc8] sm:$0xff]   ;;  %v2363_v44 = vld [vmem:[%s3945_s19 + $0xd0] sm:$0xff]  }
 0x52c   : > { %2260 = vst [vmem:[%s4843_s11] sm:$0xff] %v2259_v38   ;;  %2264 = vst [vmem:[%s4843_s11 + $0x8] sm:$0xff] %v2263_v45   ;;  %v2367_v54 = vld [vmem:[%s3945_s19 + $0xd8] sm:$0xff]   ;;  %v2371_v61 = vld [vmem:[%s3945_s19 + $0xe0] sm:$0xff]  }
 0x52d   : > { %2268 = vst [vmem:[%s4843_s11 + $0x10] sm:$0xff] %v2267_v25   ;;  %2272 = vst [vmem:[%s4843_s11 + $0x18] sm:$0xff] %v2271_v20   ;;  %v2375_v3 = vld [vmem:[%s3945_s19 + $0xe8] sm:$0xff]   ;;  %v2379_v26 = vld [vmem:[%s3945_s19 + $0xf0] sm:$0xff]  }
 0x52e   : > { %2276 = vst [vmem:[%s4843_s11 + $0x20] sm:$0xff] %v2275_v16   ;;  %2280 = vst [vmem:[%s4843_s11 + $0x28] sm:$0xff] %v2279_v10   ;;  %v2383_v2 = vld [vmem:[%s3945_s19 + $0xf8] sm:$0xff]  }
 0x52f   : > { %2284 = vst [vmem:[%s4843_s11 + $0x30] sm:$0xff] %v2283_v57   ;;  %2288 = vst [vmem:[%s4843_s11 + $0x38] sm:$0xff] %v2287_v17  }
 0x530   : > { %2292 = vst [vmem:[%s4843_s11 + $0x80] sm:$0xff] %v2291_v28   ;;  %2296 = vst [vmem:[%s4843_s11 + $0x88] sm:$0xff] %v2295_v35  }
 0x531   : > { %2300 = vst [vmem:[%s4843_s11 + $0x90] sm:$0xff] %v2299_v46   ;;  %2304 = vst [vmem:[%s4843_s11 + $0x98] sm:$0xff] %v2303_v36  }
 0x532   : > { %2308 = vst [vmem:[%s4843_s11 + $0xa0] sm:$0xff] %v2307_v53   ;;  %2312 = vst [vmem:[%s4843_s11 + $0xa8] sm:$0xff] %v2311_v4  }
 0x533   : > { %2316 = vst [vmem:[%s4843_s11 + $0xb0] sm:$0xff] %v2315_v41   ;;  %2320 = vst [vmem:[%s4843_s11 + $0xb8] sm:$0xff] %v2319_v18  }
 0x534   : > { %2324 = vst [vmem:[%s4843_s11 + $0x100] sm:$0xff] %v2323_v50   ;;  %2328 = vst [vmem:[%s4843_s11 + $0x108] sm:$0xff] %v2327_v31  }
 0x535   : > { %2332 = vst [vmem:[%s4843_s11 + $0x110] sm:$0xff] %v2331_v49   ;;  %2336 = vst [vmem:[%s4843_s11 + $0x118] sm:$0xff] %v2335_v40  }
 0x536   : > { %2340 = vst [vmem:[%s4843_s11 + $0x120] sm:$0xff] %v2339_v22   ;;  %2344 = vst [vmem:[%s4843_s11 + $0x128] sm:$0xff] %v2343_v58  }
 0x537   : > { %2348 = vst [vmem:[%s4843_s11 + $0x130] sm:$0xff] %v2347_v63   ;;  %2352 = vst [vmem:[%s4843_s11 + $0x138] sm:$0xff] %v2351_v48  }
 0x538   : > { %2356 = vst [vmem:[%s4843_s11 + $0x180] sm:$0xff] %v2355_v37   ;;  %2360 = vst [vmem:[%s4843_s11 + $0x188] sm:$0xff] %v2359_v27  }
 0x539   : > { %2364 = vst [vmem:[%s4843_s11 + $0x190] sm:$0xff] %v2363_v44   ;;  %2368 = vst [vmem:[%s4843_s11 + $0x198] sm:$0xff] %v2367_v54  }
 0x53a   : > { %2372 = vst [vmem:[%s4843_s11 + $0x1a0] sm:$0xff] %v2371_v61   ;;  %2376 = vst [vmem:[%s4843_s11 + $0x1a8] sm:$0xff] %v2375_v3  }
 0x53b   : > { %2380 = vst [vmem:[%s4843_s11 + $0x1b0] sm:$0xff] %v2379_v26   ;;  %2384 = vst [vmem:[%s4843_s11 + $0x1b8] sm:$0xff] %v2383_v2  }
 0x53c PF: > { %s4973_s27 = sld [smem:[#allocation13_spill]]  ;;  %s4974_s28 = sld [smem:[#allocation15_spill]] }
 0x53d   : > { %p3065_p11 = scmp.ge.s32.totalorder %s3485_s8, 2 }
 0x542   : > { %s2550_s13 = sand.u32 1, %s4973_s27   ;;  %p4975_p12 = scmp.ne.s32.totalorder %s4974_s28, 0 }
 0x543   : > { %s2551_s22 = scalar_lea.sflag [#allocation4], %s2550_s13 }
 0x544   : > { %p3059_p13 = pnand %p3065_p11, %p4975_p12 }
 0x546   : > { %3452 = dma.done.wait (!%p3059_p13), %s2551_s22, 1024  }
 0x547   : > { %3454 = vsyncadd (!%p3059_p13), %s2551_s22, 4294966272  ;;  %s25_s8 = sadd.s32 1, %s3485_s8   ;;  %s4976_s19 = smov %s3662_s24 }
 0x548   : > { %p22_p3 = scmp.ge.s32.totalorder %s25_s8, 6   ;;  %s4977_s27 = sld [smem:[#allocation14_spill]] }
 0x549   : > { %s4978_s29 = sld [smem:[#allocation16_spill]]  ;;  %s4979_s14 = sld [smem:[#allocation17_spill]] }
 0x54a   : > { %s4980_s24 = smov %s3461_s25  ;;  %s4981_s25 = smov %s3465_s26 }
 0x54b   : > { %s4982_s26 = smov %s4976_s19  ;;  %s4983_s28 = smov %s3481_s30 }
 0x54c   :  { %24 = sbr.rel (!%p22_p3) target bundleno = 13 (0xd), region = 204 }
 0x54f   : > { %s4984_s30 = smov %s4979_s14 }
 0x553   :  { %2563 = vsyncpa [#allocation3], 1 }
 0x554   :  { %2565 = vsyncpa [#allocation3 + $0x1], 1 }
 0x555   :  { %2566 = vsyncpa [#allocation6], 1 }
 0x556   :  { %2567 = vsyncpa [#allocation4], 1 }
 0x557   :  { %2569 = vsyncpa [#allocation4 + $0x1], 1 }

</bundles_post_ra>
